<compile_context>
chip_gen: v6e
topology: v6e:2x2x1
jax: 0.10.0
libtpu: 0.0.40
codegen_flags: <defaults>
</compile_context>

<pallas_src>
import jax
import jax.numpy as jnp
from jax.experimental import pallas as pl
from jax.experimental.pallas import tpu as pltpu

LANES = 128


def mlp_kernel(x_ref, w1_ref, b1_ref, w2_ref, b2_ref, w3_ref, b3_ref, o_ref):
    # x_ref : (2, tbs, 128) VMEM  -- batch packed dense on (sublane, lane)
    # w*/b* : flattened f32 vectors in SMEM (PyTorch (out, in) order), scalar reads
    # o_ref : (1, tbs, 128) VMEM  -- lane-dense output tile
    x0 = x_ref[0]                                   # (tbs, 128)
    x1 = x_ref[1]                                   # (tbs, 128)

    # Layer 1: 2 -> 10, ReLU.  Flat index w1[o*2 + k].
    h1 = []
    for o in range(10):
        acc = x0 * w1_ref[o * 2 + 0] + b1_ref[o]
        acc = acc + x1 * w1_ref[o * 2 + 1]
        h1.append(jnp.maximum(acc, 0.0))

    # Layers 2 (10 -> 10, ReLU) and 3 (10 -> 1) interleaved: accumulate the
    # single layer-3 output as each layer-2 feature is produced, keeping only
    # h1 (10 tiles) + the h3 accumulator + one temp live at a time.
    h3 = None
    for o in range(10):
        acc = h1[0] * w2_ref[o * 10 + 0] + b2_ref[o]
        for k in range(1, 10):
            acc = acc + h1[k] * w2_ref[o * 10 + k]
        h2_o = jnp.maximum(acc, 0.0)
        term = h2_o * w3_ref[o]
        h3 = term if h3 is None else h3 + term
    h3 = h3 + b3_ref[0]

    # Sigmoid: exp on EUP, exact reciprocal (approx=False keeps 1e-5 agreement).
    o_ref[0] = pl.reciprocal(1.0 + jnp.exp(-h3), approx=False)


def _round_up(n, m):
    return ((n + m - 1) // m) * m


def simple_nn_forward(x, params, *, tb=32768):
    """x: (B, 2). params in PyTorch layout: w* = (out, in), b* = (out,)."""
    B = x.shape[0]
    x = x.astype(jnp.float32)

    b_pad = _round_up(max(B, 1), LANES)
    if b_pad <= tb:
        tb = b_pad                                   # single tile covers the batch
    else:
        tb = max((tb // 1024) * 1024, 1024)          # multiple of 1024 => tb//128 % 8 == 0
        b_pad = _round_up(b_pad, tb)
    grid = (b_pad // tb,)
    tbs = tb // LANES

    # Batch to the minor axes: (B,2) -> (2, b_pad) zero-padded, then a free
    # row-major reshape to (2, b_pad//128, 128) so batch fills (sublane, lane).
    # If the producer can emit x already transposed/packed, feed that directly
    # and drop this transpose (do NOT load (B, 2) blocks instead).
    xT = jnp.zeros((2, b_pad), jnp.float32).at[:, :B].set(x.T)
    x3 = xT.reshape(2, b_pad // LANES, LANES)

    # Flatten weights/biases; they live in SMEM and are read as scalars in-kernel.
    w1 = params["w1"].astype(jnp.float32).reshape(-1)    # (20,)
    b1 = params["b1"].astype(jnp.float32).reshape(-1)    # (10,)
    w2 = params["w2"].astype(jnp.float32).reshape(-1)    # (100,)
    b2 = params["b2"].astype(jnp.float32).reshape(-1)    # (10,)
    w3 = params["w3"].astype(jnp.float32).reshape(-1)    # (10,)
    b3 = params["b3"].astype(jnp.float32).reshape(-1)    # (1,)

    smem = pl.BlockSpec(memory_space=pltpu.MemorySpace.SMEM)

    out = pl.pallas_call(
        mlp_kernel,
        out_shape=jax.ShapeDtypeStruct((1, b_pad // LANES, LANES), jnp.float32),
        grid=grid,
        in_specs=[
            pl.BlockSpec((2, tbs, LANES), lambda i: (0, i, 0)),   # x tile (batch dense)
            smem, smem, smem, smem, smem, smem,                   # params in SMEM
        ],
        out_specs=pl.BlockSpec((1, tbs, LANES), lambda i: (0, i, 0)),
        compiler_params=pltpu.CompilerParams(
            # On v7x (2 TCs/chip) pltpu.CORE_PARALLEL on this axis would shard
            # the batch across both TensorCores; "parallel" is safe everywhere.
            dimension_semantics=("parallel",),
        ),
    )(x3, w1, b1, w2, b2, w3, b3)

    return out.reshape(1, b_pad)[0, :B].reshape(B, 1)


def init_params(key):
    """Deterministic init matching nn.Linear shapes (PyTorch (out, in) layout)."""
    ks = jax.random.split(key, 6)

    def linear_init(kw, kb, fan_in, fan_out):
        bound = float(1.0 / (fan_in ** 0.5))
        w = jax.random.uniform(kw, (fan_out, fan_in), jnp.float32, -bound, bound)
        b = jax.random.uniform(kb, (fan_out,), jnp.float32, -bound, bound)
        return w, b

    w1, b1 = linear_init(ks[0], ks[1], 2, 10)
    w2, b2 = linear_init(ks[2], ks[3], 10, 10)
    w3, b3 = linear_init(ks[4], ks[5], 10, 1)
    return {"w1": w1, "b1": b1, "w2": w2, "b2": b2, "w3": w3, "b3": b3}


def reference_forward(x, p):
    h1 = jnp.maximum(x @ p["w1"].T + p["b1"], 0.0)
    h2 = jnp.maximum(h1 @ p["w2"].T + p["b2"], 0.0)
    return jax.nn.sigmoid(h2 @ p["w3"].T + p["b3"])


if __name__ == "__main__":
    key = jax.random.PRNGKey(0)
    kx, kp = jax.random.split(key)

    batch = 8
    x = jax.random.normal(kx, (batch, 2), dtype=jnp.float32)
    params = init_params(kp)

    out = jax.block_until_ready(simple_nn_forward(x, params))

    ref = reference_forward(x, params)
    assert out.shape == (batch, 1)
    assert jnp.allclose(out, ref, atol=1e-5, rtol=1e-5)

    print("KERNEL_OK")
</pallas_src>

<mosaic_0001>
module attributes {stable_mosaic.version = 11 : i64} {
  func.func @mlp_kernel(%arg0: i32, %arg1: memref<2x1x128xf32, #tpu.memory_space<vmem>>, %arg2: memref<20xf32, #tpu.memory_space<smem>>, %arg3: memref<10xf32, #tpu.memory_space<smem>>, %arg4: memref<100xf32, #tpu.memory_space<smem>>, %arg5: memref<10xf32, #tpu.memory_space<smem>>, %arg6: memref<10xf32, #tpu.memory_space<smem>>, %arg7: memref<1xf32, #tpu.memory_space<smem>>, %arg8: memref<1x1x128xf32, #tpu.memory_space<vmem>>) attributes {dimension_semantics = [#tpu.dimension_semantics<parallel>], iteration_bounds = array<i64: 1>, scalar_prefetch = 0 : i64, scratch_operands = 0 : i64, tpu.core_type = #tpu.core_type<tc>, window_params = [{transform_indices = @transform_0, window_bounds = array<i64: 2, 1, 128>}, {transform_indices = @transform_1, window_bounds = array<i64: 20>}, {transform_indices = @transform_2, window_bounds = array<i64: 10>}, {transform_indices = @transform_3, window_bounds = array<i64: 100>}, {transform_indices = @transform_4, window_bounds = array<i64: 10>}, {transform_indices = @transform_5, window_bounds = array<i64: 10>}, {transform_indices = @transform_6, window_bounds = array<i64: 1>}, {transform_indices = @transform_7, window_bounds = array<i64: 1, 1, 128>}]} {
    %c0 = arith.constant 0 : index
    %c0_0 = arith.constant 0 : index
    %c0_1 = arith.constant 0 : index
    %0 = vector.load %arg1[%c0, %c0_0, %c0_1] : memref<2x1x128xf32, #tpu.memory_space<vmem>>, vector<1x1x128xf32>
    %1 = vector.shape_cast %0 : vector<1x1x128xf32> to vector<1x128xf32>
    %c1 = arith.constant 1 : index
    %c0_2 = arith.constant 0 : index
    %c0_3 = arith.constant 0 : index
    %2 = vector.load %arg1[%c1, %c0_2, %c0_3] : memref<2x1x128xf32, #tpu.memory_space<vmem>>, vector<1x1x128xf32>
    %3 = vector.shape_cast %2 : vector<1x1x128xf32> to vector<1x128xf32>
    %c0_4 = arith.constant 0 : index
    %4 = memref.load %arg2[%c0_4] : memref<20xf32, #tpu.memory_space<smem>>
    %5 = vector.broadcast %4 : f32 to vector<1x128xf32>
    %6 = arith.mulf %1, %5 : vector<1x128xf32>
    %c0_5 = arith.constant 0 : index
    %7 = memref.load %arg3[%c0_5] : memref<10xf32, #tpu.memory_space<smem>>
    %8 = vector.broadcast %7 : f32 to vector<1x128xf32>
    %9 = arith.addf %6, %8 : vector<1x128xf32>
    %c1_6 = arith.constant 1 : index
    %10 = memref.load %arg2[%c1_6] : memref<20xf32, #tpu.memory_space<smem>>
    %11 = vector.broadcast %10 : f32 to vector<1x128xf32>
    %12 = arith.mulf %3, %11 : vector<1x128xf32>
    %13 = arith.addf %9, %12 : vector<1x128xf32>
    %cst = arith.constant 0.000000e+00 : f32
    %14 = vector.broadcast %cst : f32 to vector<1x128xf32>
    %15 = arith.maximumf %13, %14 : vector<1x128xf32>
    %c2 = arith.constant 2 : index
    %16 = memref.load %arg2[%c2] : memref<20xf32, #tpu.memory_space<smem>>
    %17 = vector.broadcast %16 : f32 to vector<1x128xf32>
    %18 = arith.mulf %1, %17 : vector<1x128xf32>
    %c1_7 = arith.constant 1 : index
    %19 = memref.load %arg3[%c1_7] : memref<10xf32, #tpu.memory_space<smem>>
    %20 = vector.broadcast %19 : f32 to vector<1x128xf32>
    %21 = arith.addf %18, %20 : vector<1x128xf32>
    %c3 = arith.constant 3 : index
    %22 = memref.load %arg2[%c3] : memref<20xf32, #tpu.memory_space<smem>>
    %23 = vector.broadcast %22 : f32 to vector<1x128xf32>
    %24 = arith.mulf %3, %23 : vector<1x128xf32>
    %25 = arith.addf %21, %24 : vector<1x128xf32>
    %cst_8 = arith.constant 0.000000e+00 : f32
    %26 = vector.broadcast %cst_8 : f32 to vector<1x128xf32>
    %27 = arith.maximumf %25, %26 : vector<1x128xf32>
    %c4 = arith.constant 4 : index
    %28 = memref.load %arg2[%c4] : memref<20xf32, #tpu.memory_space<smem>>
    %29 = vector.broadcast %28 : f32 to vector<1x128xf32>
    %30 = arith.mulf %1, %29 : vector<1x128xf32>
    %c2_9 = arith.constant 2 : index
    %31 = memref.load %arg3[%c2_9] : memref<10xf32, #tpu.memory_space<smem>>
    %32 = vector.broadcast %31 : f32 to vector<1x128xf32>
    %33 = arith.addf %30, %32 : vector<1x128xf32>
    %c5 = arith.constant 5 : index
    %34 = memref.load %arg2[%c5] : memref<20xf32, #tpu.memory_space<smem>>
    %35 = vector.broadcast %34 : f32 to vector<1x128xf32>
    %36 = arith.mulf %3, %35 : vector<1x128xf32>
    %37 = arith.addf %33, %36 : vector<1x128xf32>
    %cst_10 = arith.constant 0.000000e+00 : f32
    %38 = vector.broadcast %cst_10 : f32 to vector<1x128xf32>
    %39 = arith.maximumf %37, %38 : vector<1x128xf32>
    %c6 = arith.constant 6 : index
    %40 = memref.load %arg2[%c6] : memref<20xf32, #tpu.memory_space<smem>>
    %41 = vector.broadcast %40 : f32 to vector<1x128xf32>
    %42 = arith.mulf %1, %41 : vector<1x128xf32>
    %c3_11 = arith.constant 3 : index
    %43 = memref.load %arg3[%c3_11] : memref<10xf32, #tpu.memory_space<smem>>
    %44 = vector.broadcast %43 : f32 to vector<1x128xf32>
    %45 = arith.addf %42, %44 : vector<1x128xf32>
    %c7 = arith.constant 7 : index
    %46 = memref.load %arg2[%c7] : memref<20xf32, #tpu.memory_space<smem>>
    %47 = vector.broadcast %46 : f32 to vector<1x128xf32>
    %48 = arith.mulf %3, %47 : vector<1x128xf32>
    %49 = arith.addf %45, %48 : vector<1x128xf32>
    %cst_12 = arith.constant 0.000000e+00 : f32
    %50 = vector.broadcast %cst_12 : f32 to vector<1x128xf32>
    %51 = arith.maximumf %49, %50 : vector<1x128xf32>
    %c8 = arith.constant 8 : index
    %52 = memref.load %arg2[%c8] : memref<20xf32, #tpu.memory_space<smem>>
    %53 = vector.broadcast %52 : f32 to vector<1x128xf32>
    %54 = arith.mulf %1, %53 : vector<1x128xf32>
    %c4_13 = arith.constant 4 : index
    %55 = memref.load %arg3[%c4_13] : memref<10xf32, #tpu.memory_space<smem>>
    %56 = vector.broadcast %55 : f32 to vector<1x128xf32>
    %57 = arith.addf %54, %56 : vector<1x128xf32>
    %c9 = arith.constant 9 : index
    %58 = memref.load %arg2[%c9] : memref<20xf32, #tpu.memory_space<smem>>
    %59 = vector.broadcast %58 : f32 to vector<1x128xf32>
    %60 = arith.mulf %3, %59 : vector<1x128xf32>
    %61 = arith.addf %57, %60 : vector<1x128xf32>
    %cst_14 = arith.constant 0.000000e+00 : f32
    %62 = vector.broadcast %cst_14 : f32 to vector<1x128xf32>
    %63 = arith.maximumf %61, %62 : vector<1x128xf32>
    %c10 = arith.constant 10 : index
    %64 = memref.load %arg2[%c10] : memref<20xf32, #tpu.memory_space<smem>>
    %65 = vector.broadcast %64 : f32 to vector<1x128xf32>
    %66 = arith.mulf %1, %65 : vector<1x128xf32>
    %c5_15 = arith.constant 5 : index
    %67 = memref.load %arg3[%c5_15] : memref<10xf32, #tpu.memory_space<smem>>
    %68 = vector.broadcast %67 : f32 to vector<1x128xf32>
    %69 = arith.addf %66, %68 : vector<1x128xf32>
    %c11 = arith.constant 11 : index
    %70 = memref.load %arg2[%c11] : memref<20xf32, #tpu.memory_space<smem>>
    %71 = vector.broadcast %70 : f32 to vector<1x128xf32>
    %72 = arith.mulf %3, %71 : vector<1x128xf32>
    %73 = arith.addf %69, %72 : vector<1x128xf32>
    %cst_16 = arith.constant 0.000000e+00 : f32
    %74 = vector.broadcast %cst_16 : f32 to vector<1x128xf32>
    %75 = arith.maximumf %73, %74 : vector<1x128xf32>
    %c12 = arith.constant 12 : index
    %76 = memref.load %arg2[%c12] : memref<20xf32, #tpu.memory_space<smem>>
    %77 = vector.broadcast %76 : f32 to vector<1x128xf32>
    %78 = arith.mulf %1, %77 : vector<1x128xf32>
    %c6_17 = arith.constant 6 : index
    %79 = memref.load %arg3[%c6_17] : memref<10xf32, #tpu.memory_space<smem>>
    %80 = vector.broadcast %79 : f32 to vector<1x128xf32>
    %81 = arith.addf %78, %80 : vector<1x128xf32>
    %c13 = arith.constant 13 : index
    %82 = memref.load %arg2[%c13] : memref<20xf32, #tpu.memory_space<smem>>
    %83 = vector.broadcast %82 : f32 to vector<1x128xf32>
    %84 = arith.mulf %3, %83 : vector<1x128xf32>
    %85 = arith.addf %81, %84 : vector<1x128xf32>
    %cst_18 = arith.constant 0.000000e+00 : f32
    %86 = vector.broadcast %cst_18 : f32 to vector<1x128xf32>
    %87 = arith.maximumf %85, %86 : vector<1x128xf32>
    %c14 = arith.constant 14 : index
    %88 = memref.load %arg2[%c14] : memref<20xf32, #tpu.memory_space<smem>>
    %89 = vector.broadcast %88 : f32 to vector<1x128xf32>
    %90 = arith.mulf %1, %89 : vector<1x128xf32>
    %c7_19 = arith.constant 7 : index
    %91 = memref.load %arg3[%c7_19] : memref<10xf32, #tpu.memory_space<smem>>
    %92 = vector.broadcast %91 : f32 to vector<1x128xf32>
    %93 = arith.addf %90, %92 : vector<1x128xf32>
    %c15 = arith.constant 15 : index
    %94 = memref.load %arg2[%c15] : memref<20xf32, #tpu.memory_space<smem>>
    %95 = vector.broadcast %94 : f32 to vector<1x128xf32>
    %96 = arith.mulf %3, %95 : vector<1x128xf32>
    %97 = arith.addf %93, %96 : vector<1x128xf32>
    %cst_20 = arith.constant 0.000000e+00 : f32
    %98 = vector.broadcast %cst_20 : f32 to vector<1x128xf32>
    %99 = arith.maximumf %97, %98 : vector<1x128xf32>
    %c16 = arith.constant 16 : index
    %100 = memref.load %arg2[%c16] : memref<20xf32, #tpu.memory_space<smem>>
    %101 = vector.broadcast %100 : f32 to vector<1x128xf32>
    %102 = arith.mulf %1, %101 : vector<1x128xf32>
    %c8_21 = arith.constant 8 : index
    %103 = memref.load %arg3[%c8_21] : memref<10xf32, #tpu.memory_space<smem>>
    %104 = vector.broadcast %103 : f32 to vector<1x128xf32>
    %105 = arith.addf %102, %104 : vector<1x128xf32>
    %c17 = arith.constant 17 : index
    %106 = memref.load %arg2[%c17] : memref<20xf32, #tpu.memory_space<smem>>
    %107 = vector.broadcast %106 : f32 to vector<1x128xf32>
    %108 = arith.mulf %3, %107 : vector<1x128xf32>
    %109 = arith.addf %105, %108 : vector<1x128xf32>
    %cst_22 = arith.constant 0.000000e+00 : f32
    %110 = vector.broadcast %cst_22 : f32 to vector<1x128xf32>
    %111 = arith.maximumf %109, %110 : vector<1x128xf32>
    %c18 = arith.constant 18 : index
    %112 = memref.load %arg2[%c18] : memref<20xf32, #tpu.memory_space<smem>>
    %113 = vector.broadcast %112 : f32 to vector<1x128xf32>
    %114 = arith.mulf %1, %113 : vector<1x128xf32>
    %c9_23 = arith.constant 9 : index
    %115 = memref.load %arg3[%c9_23] : memref<10xf32, #tpu.memory_space<smem>>
    %116 = vector.broadcast %115 : f32 to vector<1x128xf32>
    %117 = arith.addf %114, %116 : vector<1x128xf32>
    %c19 = arith.constant 19 : index
    %118 = memref.load %arg2[%c19] : memref<20xf32, #tpu.memory_space<smem>>
    %119 = vector.broadcast %118 : f32 to vector<1x128xf32>
    %120 = arith.mulf %3, %119 : vector<1x128xf32>
    %121 = arith.addf %117, %120 : vector<1x128xf32>
    %cst_24 = arith.constant 0.000000e+00 : f32
    %122 = vector.broadcast %cst_24 : f32 to vector<1x128xf32>
    %123 = arith.maximumf %121, %122 : vector<1x128xf32>
    %c0_25 = arith.constant 0 : index
    %124 = memref.load %arg4[%c0_25] : memref<100xf32, #tpu.memory_space<smem>>
    %125 = vector.broadcast %124 : f32 to vector<1x128xf32>
    %126 = arith.mulf %15, %125 : vector<1x128xf32>
    %c0_26 = arith.constant 0 : index
    %127 = memref.load %arg5[%c0_26] : memref<10xf32, #tpu.memory_space<smem>>
    %128 = vector.broadcast %127 : f32 to vector<1x128xf32>
    %129 = arith.addf %126, %128 : vector<1x128xf32>
    %c1_27 = arith.constant 1 : index
    %130 = memref.load %arg4[%c1_27] : memref<100xf32, #tpu.memory_space<smem>>
    %131 = vector.broadcast %130 : f32 to vector<1x128xf32>
    %132 = arith.mulf %27, %131 : vector<1x128xf32>
    %133 = arith.addf %129, %132 : vector<1x128xf32>
    %c2_28 = arith.constant 2 : index
    %134 = memref.load %arg4[%c2_28] : memref<100xf32, #tpu.memory_space<smem>>
    %135 = vector.broadcast %134 : f32 to vector<1x128xf32>
    %136 = arith.mulf %39, %135 : vector<1x128xf32>
    %137 = arith.addf %133, %136 : vector<1x128xf32>
    %c3_29 = arith.constant 3 : index
    %138 = memref.load %arg4[%c3_29] : memref<100xf32, #tpu.memory_space<smem>>
    %139 = vector.broadcast %138 : f32 to vector<1x128xf32>
    %140 = arith.mulf %51, %139 : vector<1x128xf32>
    %141 = arith.addf %137, %140 : vector<1x128xf32>
    %c4_30 = arith.constant 4 : index
    %142 = memref.load %arg4[%c4_30] : memref<100xf32, #tpu.memory_space<smem>>
    %143 = vector.broadcast %142 : f32 to vector<1x128xf32>
    %144 = arith.mulf %63, %143 : vector<1x128xf32>
    %145 = arith.addf %141, %144 : vector<1x128xf32>
    %c5_31 = arith.constant 5 : index
    %146 = memref.load %arg4[%c5_31] : memref<100xf32, #tpu.memory_space<smem>>
    %147 = vector.broadcast %146 : f32 to vector<1x128xf32>
    %148 = arith.mulf %75, %147 : vector<1x128xf32>
    %149 = arith.addf %145, %148 : vector<1x128xf32>
    %c6_32 = arith.constant 6 : index
    %150 = memref.load %arg4[%c6_32] : memref<100xf32, #tpu.memory_space<smem>>
    %151 = vector.broadcast %150 : f32 to vector<1x128xf32>
    %152 = arith.mulf %87, %151 : vector<1x128xf32>
    %153 = arith.addf %149, %152 : vector<1x128xf32>
    %c7_33 = arith.constant 7 : index
    %154 = memref.load %arg4[%c7_33] : memref<100xf32, #tpu.memory_space<smem>>
    %155 = vector.broadcast %154 : f32 to vector<1x128xf32>
    %156 = arith.mulf %99, %155 : vector<1x128xf32>
    %157 = arith.addf %153, %156 : vector<1x128xf32>
    %c8_34 = arith.constant 8 : index
    %158 = memref.load %arg4[%c8_34] : memref<100xf32, #tpu.memory_space<smem>>
    %159 = vector.broadcast %158 : f32 to vector<1x128xf32>
    %160 = arith.mulf %111, %159 : vector<1x128xf32>
    %161 = arith.addf %157, %160 : vector<1x128xf32>
    %c9_35 = arith.constant 9 : index
    %162 = memref.load %arg4[%c9_35] : memref<100xf32, #tpu.memory_space<smem>>
    %163 = vector.broadcast %162 : f32 to vector<1x128xf32>
    %164 = arith.mulf %123, %163 : vector<1x128xf32>
    %165 = arith.addf %161, %164 : vector<1x128xf32>
    %cst_36 = arith.constant 0.000000e+00 : f32
    %166 = vector.broadcast %cst_36 : f32 to vector<1x128xf32>
    %167 = arith.maximumf %165, %166 : vector<1x128xf32>
    %c0_37 = arith.constant 0 : index
    %168 = memref.load %arg6[%c0_37] : memref<10xf32, #tpu.memory_space<smem>>
    %169 = vector.broadcast %168 : f32 to vector<1x128xf32>
    %170 = arith.mulf %167, %169 : vector<1x128xf32>
    %c10_38 = arith.constant 10 : index
    %171 = memref.load %arg4[%c10_38] : memref<100xf32, #tpu.memory_space<smem>>
    %172 = vector.broadcast %171 : f32 to vector<1x128xf32>
    %173 = arith.mulf %15, %172 : vector<1x128xf32>
    %c1_39 = arith.constant 1 : index
    %174 = memref.load %arg5[%c1_39] : memref<10xf32, #tpu.memory_space<smem>>
    %175 = vector.broadcast %174 : f32 to vector<1x128xf32>
    %176 = arith.addf %173, %175 : vector<1x128xf32>
    %c11_40 = arith.constant 11 : index
    %177 = memref.load %arg4[%c11_40] : memref<100xf32, #tpu.memory_space<smem>>
    %178 = vector.broadcast %177 : f32 to vector<1x128xf32>
    %179 = arith.mulf %27, %178 : vector<1x128xf32>
    %180 = arith.addf %176, %179 : vector<1x128xf32>
    %c12_41 = arith.constant 12 : index
    %181 = memref.load %arg4[%c12_41] : memref<100xf32, #tpu.memory_space<smem>>
    %182 = vector.broadcast %181 : f32 to vector<1x128xf32>
    %183 = arith.mulf %39, %182 : vector<1x128xf32>
    %184 = arith.addf %180, %183 : vector<1x128xf32>
    %c13_42 = arith.constant 13 : index
    %185 = memref.load %arg4[%c13_42] : memref<100xf32, #tpu.memory_space<smem>>
    %186 = vector.broadcast %185 : f32 to vector<1x128xf32>
    %187 = arith.mulf %51, %186 : vector<1x128xf32>
    %188 = arith.addf %184, %187 : vector<1x128xf32>
    %c14_43 = arith.constant 14 : index
    %189 = memref.load %arg4[%c14_43] : memref<100xf32, #tpu.memory_space<smem>>
    %190 = vector.broadcast %189 : f32 to vector<1x128xf32>
    %191 = arith.mulf %63, %190 : vector<1x128xf32>
    %192 = arith.addf %188, %191 : vector<1x128xf32>
    %c15_44 = arith.constant 15 : index
    %193 = memref.load %arg4[%c15_44] : memref<100xf32, #tpu.memory_space<smem>>
    %194 = vector.broadcast %193 : f32 to vector<1x128xf32>
    %195 = arith.mulf %75, %194 : vector<1x128xf32>
    %196 = arith.addf %192, %195 : vector<1x128xf32>
    %c16_45 = arith.constant 16 : index
    %197 = memref.load %arg4[%c16_45] : memref<100xf32, #tpu.memory_space<smem>>
    %198 = vector.broadcast %197 : f32 to vector<1x128xf32>
    %199 = arith.mulf %87, %198 : vector<1x128xf32>
    %200 = arith.addf %196, %199 : vector<1x128xf32>
    %c17_46 = arith.constant 17 : index
    %201 = memref.load %arg4[%c17_46] : memref<100xf32, #tpu.memory_space<smem>>
    %202 = vector.broadcast %201 : f32 to vector<1x128xf32>
    %203 = arith.mulf %99, %202 : vector<1x128xf32>
    %204 = arith.addf %200, %203 : vector<1x128xf32>
    %c18_47 = arith.constant 18 : index
    %205 = memref.load %arg4[%c18_47] : memref<100xf32, #tpu.memory_space<smem>>
    %206 = vector.broadcast %205 : f32 to vector<1x128xf32>
    %207 = arith.mulf %111, %206 : vector<1x128xf32>
    %208 = arith.addf %204, %207 : vector<1x128xf32>
    %c19_48 = arith.constant 19 : index
    %209 = memref.load %arg4[%c19_48] : memref<100xf32, #tpu.memory_space<smem>>
    %210 = vector.broadcast %209 : f32 to vector<1x128xf32>
    %211 = arith.mulf %123, %210 : vector<1x128xf32>
    %212 = arith.addf %208, %211 : vector<1x128xf32>
    %cst_49 = arith.constant 0.000000e+00 : f32
    %213 = vector.broadcast %cst_49 : f32 to vector<1x128xf32>
    %214 = arith.maximumf %212, %213 : vector<1x128xf32>
    %c1_50 = arith.constant 1 : index
    %215 = memref.load %arg6[%c1_50] : memref<10xf32, #tpu.memory_space<smem>>
    %216 = vector.broadcast %215 : f32 to vector<1x128xf32>
    %217 = arith.mulf %214, %216 : vector<1x128xf32>
    %218 = arith.addf %170, %217 : vector<1x128xf32>
    %c20 = arith.constant 20 : index
    %219 = memref.load %arg4[%c20] : memref<100xf32, #tpu.memory_space<smem>>
    %220 = vector.broadcast %219 : f32 to vector<1x128xf32>
    %221 = arith.mulf %15, %220 : vector<1x128xf32>
    %c2_51 = arith.constant 2 : index
    %222 = memref.load %arg5[%c2_51] : memref<10xf32, #tpu.memory_space<smem>>
    %223 = vector.broadcast %222 : f32 to vector<1x128xf32>
    %224 = arith.addf %221, %223 : vector<1x128xf32>
    %c21 = arith.constant 21 : index
    %225 = memref.load %arg4[%c21] : memref<100xf32, #tpu.memory_space<smem>>
    %226 = vector.broadcast %225 : f32 to vector<1x128xf32>
    %227 = arith.mulf %27, %226 : vector<1x128xf32>
    %228 = arith.addf %224, %227 : vector<1x128xf32>
    %c22 = arith.constant 22 : index
    %229 = memref.load %arg4[%c22] : memref<100xf32, #tpu.memory_space<smem>>
    %230 = vector.broadcast %229 : f32 to vector<1x128xf32>
    %231 = arith.mulf %39, %230 : vector<1x128xf32>
    %232 = arith.addf %228, %231 : vector<1x128xf32>
    %c23 = arith.constant 23 : index
    %233 = memref.load %arg4[%c23] : memref<100xf32, #tpu.memory_space<smem>>
    %234 = vector.broadcast %233 : f32 to vector<1x128xf32>
    %235 = arith.mulf %51, %234 : vector<1x128xf32>
    %236 = arith.addf %232, %235 : vector<1x128xf32>
    %c24 = arith.constant 24 : index
    %237 = memref.load %arg4[%c24] : memref<100xf32, #tpu.memory_space<smem>>
    %238 = vector.broadcast %237 : f32 to vector<1x128xf32>
    %239 = arith.mulf %63, %238 : vector<1x128xf32>
    %240 = arith.addf %236, %239 : vector<1x128xf32>
    %c25 = arith.constant 25 : index
    %241 = memref.load %arg4[%c25] : memref<100xf32, #tpu.memory_space<smem>>
    %242 = vector.broadcast %241 : f32 to vector<1x128xf32>
    %243 = arith.mulf %75, %242 : vector<1x128xf32>
    %244 = arith.addf %240, %243 : vector<1x128xf32>
    %c26 = arith.constant 26 : index
    %245 = memref.load %arg4[%c26] : memref<100xf32, #tpu.memory_space<smem>>
    %246 = vector.broadcast %245 : f32 to vector<1x128xf32>
    %247 = arith.mulf %87, %246 : vector<1x128xf32>
    %248 = arith.addf %244, %247 : vector<1x128xf32>
    %c27 = arith.constant 27 : index
    %249 = memref.load %arg4[%c27] : memref<100xf32, #tpu.memory_space<smem>>
    %250 = vector.broadcast %249 : f32 to vector<1x128xf32>
    %251 = arith.mulf %99, %250 : vector<1x128xf32>
    %252 = arith.addf %248, %251 : vector<1x128xf32>
    %c28 = arith.constant 28 : index
    %253 = memref.load %arg4[%c28] : memref<100xf32, #tpu.memory_space<smem>>
    %254 = vector.broadcast %253 : f32 to vector<1x128xf32>
    %255 = arith.mulf %111, %254 : vector<1x128xf32>
    %256 = arith.addf %252, %255 : vector<1x128xf32>
    %c29 = arith.constant 29 : index
    %257 = memref.load %arg4[%c29] : memref<100xf32, #tpu.memory_space<smem>>
    %258 = vector.broadcast %257 : f32 to vector<1x128xf32>
    %259 = arith.mulf %123, %258 : vector<1x128xf32>
    %260 = arith.addf %256, %259 : vector<1x128xf32>
    %cst_52 = arith.constant 0.000000e+00 : f32
    %261 = vector.broadcast %cst_52 : f32 to vector<1x128xf32>
    %262 = arith.maximumf %260, %261 : vector<1x128xf32>
    %c2_53 = arith.constant 2 : index
    %263 = memref.load %arg6[%c2_53] : memref<10xf32, #tpu.memory_space<smem>>
    %264 = vector.broadcast %263 : f32 to vector<1x128xf32>
    %265 = arith.mulf %262, %264 : vector<1x128xf32>
    %266 = arith.addf %218, %265 : vector<1x128xf32>
    %c30 = arith.constant 30 : index
    %267 = memref.load %arg4[%c30] : memref<100xf32, #tpu.memory_space<smem>>
    %268 = vector.broadcast %267 : f32 to vector<1x128xf32>
    %269 = arith.mulf %15, %268 : vector<1x128xf32>
    %c3_54 = arith.constant 3 : index
    %270 = memref.load %arg5[%c3_54] : memref<10xf32, #tpu.memory_space<smem>>
    %271 = vector.broadcast %270 : f32 to vector<1x128xf32>
    %272 = arith.addf %269, %271 : vector<1x128xf32>
    %c31 = arith.constant 31 : index
    %273 = memref.load %arg4[%c31] : memref<100xf32, #tpu.memory_space<smem>>
    %274 = vector.broadcast %273 : f32 to vector<1x128xf32>
    %275 = arith.mulf %27, %274 : vector<1x128xf32>
    %276 = arith.addf %272, %275 : vector<1x128xf32>
    %c32 = arith.constant 32 : index
    %277 = memref.load %arg4[%c32] : memref<100xf32, #tpu.memory_space<smem>>
    %278 = vector.broadcast %277 : f32 to vector<1x128xf32>
    %279 = arith.mulf %39, %278 : vector<1x128xf32>
    %280 = arith.addf %276, %279 : vector<1x128xf32>
    %c33 = arith.constant 33 : index
    %281 = memref.load %arg4[%c33] : memref<100xf32, #tpu.memory_space<smem>>
    %282 = vector.broadcast %281 : f32 to vector<1x128xf32>
    %283 = arith.mulf %51, %282 : vector<1x128xf32>
    %284 = arith.addf %280, %283 : vector<1x128xf32>
    %c34 = arith.constant 34 : index
    %285 = memref.load %arg4[%c34] : memref<100xf32, #tpu.memory_space<smem>>
    %286 = vector.broadcast %285 : f32 to vector<1x128xf32>
    %287 = arith.mulf %63, %286 : vector<1x128xf32>
    %288 = arith.addf %284, %287 : vector<1x128xf32>
    %c35 = arith.constant 35 : index
    %289 = memref.load %arg4[%c35] : memref<100xf32, #tpu.memory_space<smem>>
    %290 = vector.broadcast %289 : f32 to vector<1x128xf32>
    %291 = arith.mulf %75, %290 : vector<1x128xf32>
    %292 = arith.addf %288, %291 : vector<1x128xf32>
    %c36 = arith.constant 36 : index
    %293 = memref.load %arg4[%c36] : memref<100xf32, #tpu.memory_space<smem>>
    %294 = vector.broadcast %293 : f32 to vector<1x128xf32>
    %295 = arith.mulf %87, %294 : vector<1x128xf32>
    %296 = arith.addf %292, %295 : vector<1x128xf32>
    %c37 = arith.constant 37 : index
    %297 = memref.load %arg4[%c37] : memref<100xf32, #tpu.memory_space<smem>>
    %298 = vector.broadcast %297 : f32 to vector<1x128xf32>
    %299 = arith.mulf %99, %298 : vector<1x128xf32>
    %300 = arith.addf %296, %299 : vector<1x128xf32>
    %c38 = arith.constant 38 : index
    %301 = memref.load %arg4[%c38] : memref<100xf32, #tpu.memory_space<smem>>
    %302 = vector.broadcast %301 : f32 to vector<1x128xf32>
    %303 = arith.mulf %111, %302 : vector<1x128xf32>
    %304 = arith.addf %300, %303 : vector<1x128xf32>
    %c39 = arith.constant 39 : index
    %305 = memref.load %arg4[%c39] : memref<100xf32, #tpu.memory_space<smem>>
    %306 = vector.broadcast %305 : f32 to vector<1x128xf32>
    %307 = arith.mulf %123, %306 : vector<1x128xf32>
    %308 = arith.addf %304, %307 : vector<1x128xf32>
    %cst_55 = arith.constant 0.000000e+00 : f32
    %309 = vector.broadcast %cst_55 : f32 to vector<1x128xf32>
    %310 = arith.maximumf %308, %309 : vector<1x128xf32>
    %c3_56 = arith.constant 3 : index
    %311 = memref.load %arg6[%c3_56] : memref<10xf32, #tpu.memory_space<smem>>
    %312 = vector.broadcast %311 : f32 to vector<1x128xf32>
    %313 = arith.mulf %310, %312 : vector<1x128xf32>
    %314 = arith.addf %266, %313 : vector<1x128xf32>
    %c40 = arith.constant 40 : index
    %315 = memref.load %arg4[%c40] : memref<100xf32, #tpu.memory_space<smem>>
    %316 = vector.broadcast %315 : f32 to vector<1x128xf32>
    %317 = arith.mulf %15, %316 : vector<1x128xf32>
    %c4_57 = arith.constant 4 : index
    %318 = memref.load %arg5[%c4_57] : memref<10xf32, #tpu.memory_space<smem>>
    %319 = vector.broadcast %318 : f32 to vector<1x128xf32>
    %320 = arith.addf %317, %319 : vector<1x128xf32>
    %c41 = arith.constant 41 : index
    %321 = memref.load %arg4[%c41] : memref<100xf32, #tpu.memory_space<smem>>
    %322 = vector.broadcast %321 : f32 to vector<1x128xf32>
    %323 = arith.mulf %27, %322 : vector<1x128xf32>
    %324 = arith.addf %320, %323 : vector<1x128xf32>
    %c42 = arith.constant 42 : index
    %325 = memref.load %arg4[%c42] : memref<100xf32, #tpu.memory_space<smem>>
    %326 = vector.broadcast %325 : f32 to vector<1x128xf32>
    %327 = arith.mulf %39, %326 : vector<1x128xf32>
    %328 = arith.addf %324, %327 : vector<1x128xf32>
    %c43 = arith.constant 43 : index
    %329 = memref.load %arg4[%c43] : memref<100xf32, #tpu.memory_space<smem>>
    %330 = vector.broadcast %329 : f32 to vector<1x128xf32>
    %331 = arith.mulf %51, %330 : vector<1x128xf32>
    %332 = arith.addf %328, %331 : vector<1x128xf32>
    %c44 = arith.constant 44 : index
    %333 = memref.load %arg4[%c44] : memref<100xf32, #tpu.memory_space<smem>>
    %334 = vector.broadcast %333 : f32 to vector<1x128xf32>
    %335 = arith.mulf %63, %334 : vector<1x128xf32>
    %336 = arith.addf %332, %335 : vector<1x128xf32>
    %c45 = arith.constant 45 : index
    %337 = memref.load %arg4[%c45] : memref<100xf32, #tpu.memory_space<smem>>
    %338 = vector.broadcast %337 : f32 to vector<1x128xf32>
    %339 = arith.mulf %75, %338 : vector<1x128xf32>
    %340 = arith.addf %336, %339 : vector<1x128xf32>
    %c46 = arith.constant 46 : index
    %341 = memref.load %arg4[%c46] : memref<100xf32, #tpu.memory_space<smem>>
    %342 = vector.broadcast %341 : f32 to vector<1x128xf32>
    %343 = arith.mulf %87, %342 : vector<1x128xf32>
    %344 = arith.addf %340, %343 : vector<1x128xf32>
    %c47 = arith.constant 47 : index
    %345 = memref.load %arg4[%c47] : memref<100xf32, #tpu.memory_space<smem>>
    %346 = vector.broadcast %345 : f32 to vector<1x128xf32>
    %347 = arith.mulf %99, %346 : vector<1x128xf32>
    %348 = arith.addf %344, %347 : vector<1x128xf32>
    %c48 = arith.constant 48 : index
    %349 = memref.load %arg4[%c48] : memref<100xf32, #tpu.memory_space<smem>>
    %350 = vector.broadcast %349 : f32 to vector<1x128xf32>
    %351 = arith.mulf %111, %350 : vector<1x128xf32>
    %352 = arith.addf %348, %351 : vector<1x128xf32>
    %c49 = arith.constant 49 : index
    %353 = memref.load %arg4[%c49] : memref<100xf32, #tpu.memory_space<smem>>
    %354 = vector.broadcast %353 : f32 to vector<1x128xf32>
    %355 = arith.mulf %123, %354 : vector<1x128xf32>
    %356 = arith.addf %352, %355 : vector<1x128xf32>
    %cst_58 = arith.constant 0.000000e+00 : f32
    %357 = vector.broadcast %cst_58 : f32 to vector<1x128xf32>
    %358 = arith.maximumf %356, %357 : vector<1x128xf32>
    %c4_59 = arith.constant 4 : index
    %359 = memref.load %arg6[%c4_59] : memref<10xf32, #tpu.memory_space<smem>>
    %360 = vector.broadcast %359 : f32 to vector<1x128xf32>
    %361 = arith.mulf %358, %360 : vector<1x128xf32>
    %362 = arith.addf %314, %361 : vector<1x128xf32>
    %c50 = arith.constant 50 : index
    %363 = memref.load %arg4[%c50] : memref<100xf32, #tpu.memory_space<smem>>
    %364 = vector.broadcast %363 : f32 to vector<1x128xf32>
    %365 = arith.mulf %15, %364 : vector<1x128xf32>
    %c5_60 = arith.constant 5 : index
    %366 = memref.load %arg5[%c5_60] : memref<10xf32, #tpu.memory_space<smem>>
    %367 = vector.broadcast %366 : f32 to vector<1x128xf32>
    %368 = arith.addf %365, %367 : vector<1x128xf32>
    %c51 = arith.constant 51 : index
    %369 = memref.load %arg4[%c51] : memref<100xf32, #tpu.memory_space<smem>>
    %370 = vector.broadcast %369 : f32 to vector<1x128xf32>
    %371 = arith.mulf %27, %370 : vector<1x128xf32>
    %372 = arith.addf %368, %371 : vector<1x128xf32>
    %c52 = arith.constant 52 : index
    %373 = memref.load %arg4[%c52] : memref<100xf32, #tpu.memory_space<smem>>
    %374 = vector.broadcast %373 : f32 to vector<1x128xf32>
    %375 = arith.mulf %39, %374 : vector<1x128xf32>
    %376 = arith.addf %372, %375 : vector<1x128xf32>
    %c53 = arith.constant 53 : index
    %377 = memref.load %arg4[%c53] : memref<100xf32, #tpu.memory_space<smem>>
    %378 = vector.broadcast %377 : f32 to vector<1x128xf32>
    %379 = arith.mulf %51, %378 : vector<1x128xf32>
    %380 = arith.addf %376, %379 : vector<1x128xf32>
    %c54 = arith.constant 54 : index
    %381 = memref.load %arg4[%c54] : memref<100xf32, #tpu.memory_space<smem>>
    %382 = vector.broadcast %381 : f32 to vector<1x128xf32>
    %383 = arith.mulf %63, %382 : vector<1x128xf32>
    %384 = arith.addf %380, %383 : vector<1x128xf32>
    %c55 = arith.constant 55 : index
    %385 = memref.load %arg4[%c55] : memref<100xf32, #tpu.memory_space<smem>>
    %386 = vector.broadcast %385 : f32 to vector<1x128xf32>
    %387 = arith.mulf %75, %386 : vector<1x128xf32>
    %388 = arith.addf %384, %387 : vector<1x128xf32>
    %c56 = arith.constant 56 : index
    %389 = memref.load %arg4[%c56] : memref<100xf32, #tpu.memory_space<smem>>
    %390 = vector.broadcast %389 : f32 to vector<1x128xf32>
    %391 = arith.mulf %87, %390 : vector<1x128xf32>
    %392 = arith.addf %388, %391 : vector<1x128xf32>
    %c57 = arith.constant 57 : index
    %393 = memref.load %arg4[%c57] : memref<100xf32, #tpu.memory_space<smem>>
    %394 = vector.broadcast %393 : f32 to vector<1x128xf32>
    %395 = arith.mulf %99, %394 : vector<1x128xf32>
    %396 = arith.addf %392, %395 : vector<1x128xf32>
    %c58 = arith.constant 58 : index
    %397 = memref.load %arg4[%c58] : memref<100xf32, #tpu.memory_space<smem>>
    %398 = vector.broadcast %397 : f32 to vector<1x128xf32>
    %399 = arith.mulf %111, %398 : vector<1x128xf32>
    %400 = arith.addf %396, %399 : vector<1x128xf32>
    %c59 = arith.constant 59 : index
    %401 = memref.load %arg4[%c59] : memref<100xf32, #tpu.memory_space<smem>>
    %402 = vector.broadcast %401 : f32 to vector<1x128xf32>
    %403 = arith.mulf %123, %402 : vector<1x128xf32>
    %404 = arith.addf %400, %403 : vector<1x128xf32>
    %cst_61 = arith.constant 0.000000e+00 : f32
    %405 = vector.broadcast %cst_61 : f32 to vector<1x128xf32>
    %406 = arith.maximumf %404, %405 : vector<1x128xf32>
    %c5_62 = arith.constant 5 : index
    %407 = memref.load %arg6[%c5_62] : memref<10xf32, #tpu.memory_space<smem>>
    %408 = vector.broadcast %407 : f32 to vector<1x128xf32>
    %409 = arith.mulf %406, %408 : vector<1x128xf32>
    %410 = arith.addf %362, %409 : vector<1x128xf32>
    %c60 = arith.constant 60 : index
    %411 = memref.load %arg4[%c60] : memref<100xf32, #tpu.memory_space<smem>>
    %412 = vector.broadcast %411 : f32 to vector<1x128xf32>
    %413 = arith.mulf %15, %412 : vector<1x128xf32>
    %c6_63 = arith.constant 6 : index
    %414 = memref.load %arg5[%c6_63] : memref<10xf32, #tpu.memory_space<smem>>
    %415 = vector.broadcast %414 : f32 to vector<1x128xf32>
    %416 = arith.addf %413, %415 : vector<1x128xf32>
    %c61 = arith.constant 61 : index
    %417 = memref.load %arg4[%c61] : memref<100xf32, #tpu.memory_space<smem>>
    %418 = vector.broadcast %417 : f32 to vector<1x128xf32>
    %419 = arith.mulf %27, %418 : vector<1x128xf32>
    %420 = arith.addf %416, %419 : vector<1x128xf32>
    %c62 = arith.constant 62 : index
    %421 = memref.load %arg4[%c62] : memref<100xf32, #tpu.memory_space<smem>>
    %422 = vector.broadcast %421 : f32 to vector<1x128xf32>
    %423 = arith.mulf %39, %422 : vector<1x128xf32>
    %424 = arith.addf %420, %423 : vector<1x128xf32>
    %c63 = arith.constant 63 : index
    %425 = memref.load %arg4[%c63] : memref<100xf32, #tpu.memory_space<smem>>
    %426 = vector.broadcast %425 : f32 to vector<1x128xf32>
    %427 = arith.mulf %51, %426 : vector<1x128xf32>
    %428 = arith.addf %424, %427 : vector<1x128xf32>
    %c64 = arith.constant 64 : index
    %429 = memref.load %arg4[%c64] : memref<100xf32, #tpu.memory_space<smem>>
    %430 = vector.broadcast %429 : f32 to vector<1x128xf32>
    %431 = arith.mulf %63, %430 : vector<1x128xf32>
    %432 = arith.addf %428, %431 : vector<1x128xf32>
    %c65 = arith.constant 65 : index
    %433 = memref.load %arg4[%c65] : memref<100xf32, #tpu.memory_space<smem>>
    %434 = vector.broadcast %433 : f32 to vector<1x128xf32>
    %435 = arith.mulf %75, %434 : vector<1x128xf32>
    %436 = arith.addf %432, %435 : vector<1x128xf32>
    %c66 = arith.constant 66 : index
    %437 = memref.load %arg4[%c66] : memref<100xf32, #tpu.memory_space<smem>>
    %438 = vector.broadcast %437 : f32 to vector<1x128xf32>
    %439 = arith.mulf %87, %438 : vector<1x128xf32>
    %440 = arith.addf %436, %439 : vector<1x128xf32>
    %c67 = arith.constant 67 : index
    %441 = memref.load %arg4[%c67] : memref<100xf32, #tpu.memory_space<smem>>
    %442 = vector.broadcast %441 : f32 to vector<1x128xf32>
    %443 = arith.mulf %99, %442 : vector<1x128xf32>
    %444 = arith.addf %440, %443 : vector<1x128xf32>
    %c68 = arith.constant 68 : index
    %445 = memref.load %arg4[%c68] : memref<100xf32, #tpu.memory_space<smem>>
    %446 = vector.broadcast %445 : f32 to vector<1x128xf32>
    %447 = arith.mulf %111, %446 : vector<1x128xf32>
    %448 = arith.addf %444, %447 : vector<1x128xf32>
    %c69 = arith.constant 69 : index
    %449 = memref.load %arg4[%c69] : memref<100xf32, #tpu.memory_space<smem>>
    %450 = vector.broadcast %449 : f32 to vector<1x128xf32>
    %451 = arith.mulf %123, %450 : vector<1x128xf32>
    %452 = arith.addf %448, %451 : vector<1x128xf32>
    %cst_64 = arith.constant 0.000000e+00 : f32
    %453 = vector.broadcast %cst_64 : f32 to vector<1x128xf32>
    %454 = arith.maximumf %452, %453 : vector<1x128xf32>
    %c6_65 = arith.constant 6 : index
    %455 = memref.load %arg6[%c6_65] : memref<10xf32, #tpu.memory_space<smem>>
    %456 = vector.broadcast %455 : f32 to vector<1x128xf32>
    %457 = arith.mulf %454, %456 : vector<1x128xf32>
    %458 = arith.addf %410, %457 : vector<1x128xf32>
    %c70 = arith.constant 70 : index
    %459 = memref.load %arg4[%c70] : memref<100xf32, #tpu.memory_space<smem>>
    %460 = vector.broadcast %459 : f32 to vector<1x128xf32>
    %461 = arith.mulf %15, %460 : vector<1x128xf32>
    %c7_66 = arith.constant 7 : index
    %462 = memref.load %arg5[%c7_66] : memref<10xf32, #tpu.memory_space<smem>>
    %463 = vector.broadcast %462 : f32 to vector<1x128xf32>
    %464 = arith.addf %461, %463 : vector<1x128xf32>
    %c71 = arith.constant 71 : index
    %465 = memref.load %arg4[%c71] : memref<100xf32, #tpu.memory_space<smem>>
    %466 = vector.broadcast %465 : f32 to vector<1x128xf32>
    %467 = arith.mulf %27, %466 : vector<1x128xf32>
    %468 = arith.addf %464, %467 : vector<1x128xf32>
    %c72 = arith.constant 72 : index
    %469 = memref.load %arg4[%c72] : memref<100xf32, #tpu.memory_space<smem>>
    %470 = vector.broadcast %469 : f32 to vector<1x128xf32>
    %471 = arith.mulf %39, %470 : vector<1x128xf32>
    %472 = arith.addf %468, %471 : vector<1x128xf32>
    %c73 = arith.constant 73 : index
    %473 = memref.load %arg4[%c73] : memref<100xf32, #tpu.memory_space<smem>>
    %474 = vector.broadcast %473 : f32 to vector<1x128xf32>
    %475 = arith.mulf %51, %474 : vector<1x128xf32>
    %476 = arith.addf %472, %475 : vector<1x128xf32>
    %c74 = arith.constant 74 : index
    %477 = memref.load %arg4[%c74] : memref<100xf32, #tpu.memory_space<smem>>
    %478 = vector.broadcast %477 : f32 to vector<1x128xf32>
    %479 = arith.mulf %63, %478 : vector<1x128xf32>
    %480 = arith.addf %476, %479 : vector<1x128xf32>
    %c75 = arith.constant 75 : index
    %481 = memref.load %arg4[%c75] : memref<100xf32, #tpu.memory_space<smem>>
    %482 = vector.broadcast %481 : f32 to vector<1x128xf32>
    %483 = arith.mulf %75, %482 : vector<1x128xf32>
    %484 = arith.addf %480, %483 : vector<1x128xf32>
    %c76 = arith.constant 76 : index
    %485 = memref.load %arg4[%c76] : memref<100xf32, #tpu.memory_space<smem>>
    %486 = vector.broadcast %485 : f32 to vector<1x128xf32>
    %487 = arith.mulf %87, %486 : vector<1x128xf32>
    %488 = arith.addf %484, %487 : vector<1x128xf32>
    %c77 = arith.constant 77 : index
    %489 = memref.load %arg4[%c77] : memref<100xf32, #tpu.memory_space<smem>>
    %490 = vector.broadcast %489 : f32 to vector<1x128xf32>
    %491 = arith.mulf %99, %490 : vector<1x128xf32>
    %492 = arith.addf %488, %491 : vector<1x128xf32>
    %c78 = arith.constant 78 : index
    %493 = memref.load %arg4[%c78] : memref<100xf32, #tpu.memory_space<smem>>
    %494 = vector.broadcast %493 : f32 to vector<1x128xf32>
    %495 = arith.mulf %111, %494 : vector<1x128xf32>
    %496 = arith.addf %492, %495 : vector<1x128xf32>
    %c79 = arith.constant 79 : index
    %497 = memref.load %arg4[%c79] : memref<100xf32, #tpu.memory_space<smem>>
    %498 = vector.broadcast %497 : f32 to vector<1x128xf32>
    %499 = arith.mulf %123, %498 : vector<1x128xf32>
    %500 = arith.addf %496, %499 : vector<1x128xf32>
    %cst_67 = arith.constant 0.000000e+00 : f32
    %501 = vector.broadcast %cst_67 : f32 to vector<1x128xf32>
    %502 = arith.maximumf %500, %501 : vector<1x128xf32>
    %c7_68 = arith.constant 7 : index
    %503 = memref.load %arg6[%c7_68] : memref<10xf32, #tpu.memory_space<smem>>
    %504 = vector.broadcast %503 : f32 to vector<1x128xf32>
    %505 = arith.mulf %502, %504 : vector<1x128xf32>
    %506 = arith.addf %458, %505 : vector<1x128xf32>
    %c80 = arith.constant 80 : index
    %507 = memref.load %arg4[%c80] : memref<100xf32, #tpu.memory_space<smem>>
    %508 = vector.broadcast %507 : f32 to vector<1x128xf32>
    %509 = arith.mulf %15, %508 : vector<1x128xf32>
    %c8_69 = arith.constant 8 : index
    %510 = memref.load %arg5[%c8_69] : memref<10xf32, #tpu.memory_space<smem>>
    %511 = vector.broadcast %510 : f32 to vector<1x128xf32>
    %512 = arith.addf %509, %511 : vector<1x128xf32>
    %c81 = arith.constant 81 : index
    %513 = memref.load %arg4[%c81] : memref<100xf32, #tpu.memory_space<smem>>
    %514 = vector.broadcast %513 : f32 to vector<1x128xf32>
    %515 = arith.mulf %27, %514 : vector<1x128xf32>
    %516 = arith.addf %512, %515 : vector<1x128xf32>
    %c82 = arith.constant 82 : index
    %517 = memref.load %arg4[%c82] : memref<100xf32, #tpu.memory_space<smem>>
    %518 = vector.broadcast %517 : f32 to vector<1x128xf32>
    %519 = arith.mulf %39, %518 : vector<1x128xf32>
    %520 = arith.addf %516, %519 : vector<1x128xf32>
    %c83 = arith.constant 83 : index
    %521 = memref.load %arg4[%c83] : memref<100xf32, #tpu.memory_space<smem>>
    %522 = vector.broadcast %521 : f32 to vector<1x128xf32>
    %523 = arith.mulf %51, %522 : vector<1x128xf32>
    %524 = arith.addf %520, %523 : vector<1x128xf32>
    %c84 = arith.constant 84 : index
    %525 = memref.load %arg4[%c84] : memref<100xf32, #tpu.memory_space<smem>>
    %526 = vector.broadcast %525 : f32 to vector<1x128xf32>
    %527 = arith.mulf %63, %526 : vector<1x128xf32>
    %528 = arith.addf %524, %527 : vector<1x128xf32>
    %c85 = arith.constant 85 : index
    %529 = memref.load %arg4[%c85] : memref<100xf32, #tpu.memory_space<smem>>
    %530 = vector.broadcast %529 : f32 to vector<1x128xf32>
    %531 = arith.mulf %75, %530 : vector<1x128xf32>
    %532 = arith.addf %528, %531 : vector<1x128xf32>
    %c86 = arith.constant 86 : index
    %533 = memref.load %arg4[%c86] : memref<100xf32, #tpu.memory_space<smem>>
    %534 = vector.broadcast %533 : f32 to vector<1x128xf32>
    %535 = arith.mulf %87, %534 : vector<1x128xf32>
    %536 = arith.addf %532, %535 : vector<1x128xf32>
    %c87 = arith.constant 87 : index
    %537 = memref.load %arg4[%c87] : memref<100xf32, #tpu.memory_space<smem>>
    %538 = vector.broadcast %537 : f32 to vector<1x128xf32>
    %539 = arith.mulf %99, %538 : vector<1x128xf32>
    %540 = arith.addf %536, %539 : vector<1x128xf32>
    %c88 = arith.constant 88 : index
    %541 = memref.load %arg4[%c88] : memref<100xf32, #tpu.memory_space<smem>>
    %542 = vector.broadcast %541 : f32 to vector<1x128xf32>
    %543 = arith.mulf %111, %542 : vector<1x128xf32>
    %544 = arith.addf %540, %543 : vector<1x128xf32>
    %c89 = arith.constant 89 : index
    %545 = memref.load %arg4[%c89] : memref<100xf32, #tpu.memory_space<smem>>
    %546 = vector.broadcast %545 : f32 to vector<1x128xf32>
    %547 = arith.mulf %123, %546 : vector<1x128xf32>
    %548 = arith.addf %544, %547 : vector<1x128xf32>
    %cst_70 = arith.constant 0.000000e+00 : f32
    %549 = vector.broadcast %cst_70 : f32 to vector<1x128xf32>
    %550 = arith.maximumf %548, %549 : vector<1x128xf32>
    %c8_71 = arith.constant 8 : index
    %551 = memref.load %arg6[%c8_71] : memref<10xf32, #tpu.memory_space<smem>>
    %552 = vector.broadcast %551 : f32 to vector<1x128xf32>
    %553 = arith.mulf %550, %552 : vector<1x128xf32>
    %554 = arith.addf %506, %553 : vector<1x128xf32>
    %c90 = arith.constant 90 : index
    %555 = memref.load %arg4[%c90] : memref<100xf32, #tpu.memory_space<smem>>
    %556 = vector.broadcast %555 : f32 to vector<1x128xf32>
    %557 = arith.mulf %15, %556 : vector<1x128xf32>
    %c9_72 = arith.constant 9 : index
    %558 = memref.load %arg5[%c9_72] : memref<10xf32, #tpu.memory_space<smem>>
    %559 = vector.broadcast %558 : f32 to vector<1x128xf32>
    %560 = arith.addf %557, %559 : vector<1x128xf32>
    %c91 = arith.constant 91 : index
    %561 = memref.load %arg4[%c91] : memref<100xf32, #tpu.memory_space<smem>>
    %562 = vector.broadcast %561 : f32 to vector<1x128xf32>
    %563 = arith.mulf %27, %562 : vector<1x128xf32>
    %564 = arith.addf %560, %563 : vector<1x128xf32>
    %c92 = arith.constant 92 : index
    %565 = memref.load %arg4[%c92] : memref<100xf32, #tpu.memory_space<smem>>
    %566 = vector.broadcast %565 : f32 to vector<1x128xf32>
    %567 = arith.mulf %39, %566 : vector<1x128xf32>
    %568 = arith.addf %564, %567 : vector<1x128xf32>
    %c93 = arith.constant 93 : index
    %569 = memref.load %arg4[%c93] : memref<100xf32, #tpu.memory_space<smem>>
    %570 = vector.broadcast %569 : f32 to vector<1x128xf32>
    %571 = arith.mulf %51, %570 : vector<1x128xf32>
    %572 = arith.addf %568, %571 : vector<1x128xf32>
    %c94 = arith.constant 94 : index
    %573 = memref.load %arg4[%c94] : memref<100xf32, #tpu.memory_space<smem>>
    %574 = vector.broadcast %573 : f32 to vector<1x128xf32>
    %575 = arith.mulf %63, %574 : vector<1x128xf32>
    %576 = arith.addf %572, %575 : vector<1x128xf32>
    %c95 = arith.constant 95 : index
    %577 = memref.load %arg4[%c95] : memref<100xf32, #tpu.memory_space<smem>>
    %578 = vector.broadcast %577 : f32 to vector<1x128xf32>
    %579 = arith.mulf %75, %578 : vector<1x128xf32>
    %580 = arith.addf %576, %579 : vector<1x128xf32>
    %c96 = arith.constant 96 : index
    %581 = memref.load %arg4[%c96] : memref<100xf32, #tpu.memory_space<smem>>
    %582 = vector.broadcast %581 : f32 to vector<1x128xf32>
    %583 = arith.mulf %87, %582 : vector<1x128xf32>
    %584 = arith.addf %580, %583 : vector<1x128xf32>
    %c97 = arith.constant 97 : index
    %585 = memref.load %arg4[%c97] : memref<100xf32, #tpu.memory_space<smem>>
    %586 = vector.broadcast %585 : f32 to vector<1x128xf32>
    %587 = arith.mulf %99, %586 : vector<1x128xf32>
    %588 = arith.addf %584, %587 : vector<1x128xf32>
    %c98 = arith.constant 98 : index
    %589 = memref.load %arg4[%c98] : memref<100xf32, #tpu.memory_space<smem>>
    %590 = vector.broadcast %589 : f32 to vector<1x128xf32>
    %591 = arith.mulf %111, %590 : vector<1x128xf32>
    %592 = arith.addf %588, %591 : vector<1x128xf32>
    %c99 = arith.constant 99 : index
    %593 = memref.load %arg4[%c99] : memref<100xf32, #tpu.memory_space<smem>>
    %594 = vector.broadcast %593 : f32 to vector<1x128xf32>
    %595 = arith.mulf %123, %594 : vector<1x128xf32>
    %596 = arith.addf %592, %595 : vector<1x128xf32>
    %cst_73 = arith.constant 0.000000e+00 : f32
    %597 = vector.broadcast %cst_73 : f32 to vector<1x128xf32>
    %598 = arith.maximumf %596, %597 : vector<1x128xf32>
    %c9_74 = arith.constant 9 : index
    %599 = memref.load %arg6[%c9_74] : memref<10xf32, #tpu.memory_space<smem>>
    %600 = vector.broadcast %599 : f32 to vector<1x128xf32>
    %601 = arith.mulf %598, %600 : vector<1x128xf32>
    %602 = arith.addf %554, %601 : vector<1x128xf32>
    %c0_75 = arith.constant 0 : index
    %603 = memref.load %arg7[%c0_75] : memref<1xf32, #tpu.memory_space<smem>>
    %604 = vector.broadcast %603 : f32 to vector<1x128xf32>
    %605 = arith.addf %602, %604 : vector<1x128xf32>
    %cst_76 = arith.constant 0.000000e+00 : f32
    %606 = vector.broadcast %cst_76 : f32 to vector<1x128xf32>
    %607 = arith.subf %606, %605 : vector<1x128xf32>
    %608 = math.exp %607 : vector<1x128xf32>
    %cst_77 = arith.constant 1.000000e+00 : f32
    %609 = vector.broadcast %cst_77 : f32 to vector<1x128xf32>
    %610 = arith.addf %609, %608 : vector<1x128xf32>
    %611 = tpu.reciprocal %610 : vector<1x128xf32> -> vector<1x128xf32>
    %c0_78 = arith.constant 0 : index
    %c0_79 = arith.constant 0 : index
    %c0_80 = arith.constant 0 : index
    %612 = vector.load %arg8[%c0_78, %c0_79, %c0_80] : memref<1x1x128xf32, #tpu.memory_space<vmem>>, vector<1x1x128xf32>
    %613 = vector.shape_cast %612 : vector<1x1x128xf32> to vector<1x128xf32>
    %614 = vector.shape_cast %611 : vector<1x128xf32> to vector<1x1x128xf32>
    tpu.vector_store %arg8[%c0_78, %c0_79, %c0_80], %614 {strides = array<i32>} : memref<1x1x128xf32, #tpu.memory_space<vmem>>, vector<1x1x128xf32>,
    return
  }
  func.func @transform_0(%arg0: i32) -> (i32, i32, i32) {
    %c0_i32 = arith.constant 0 : i32
    %c0_i32_0 = arith.constant 0 : i32
    %c0_i32_1 = arith.constant 0 : i32
    return %c0_i32, %arg0, %c0_i32_0 : i32, i32, i32
  }
  func.func @transform_1(%arg0: i32) -> i32 {
    %c0_i32 = arith.constant 0 : i32
    %c0_i32_0 = arith.constant 0 : i32
    return %c0_i32 : i32
  }
  func.func @transform_2(%arg0: i32) -> i32 {
    %c0_i32 = arith.constant 0 : i32
    %c0_i32_0 = arith.constant 0 : i32
    return %c0_i32 : i32
  }
  func.func @transform_3(%arg0: i32) -> i32 {
    %c0_i32 = arith.constant 0 : i32
    %c0_i32_0 = arith.constant 0 : i32
    return %c0_i32 : i32
  }
  func.func @transform_4(%arg0: i32) -> i32 {
    %c0_i32 = arith.constant 0 : i32
    %c0_i32_0 = arith.constant 0 : i32
    return %c0_i32 : i32
  }
  func.func @transform_5(%arg0: i32) -> i32 {
    %c0_i32 = arith.constant 0 : i32
    %c0_i32_0 = arith.constant 0 : i32
    return %c0_i32 : i32
  }
  func.func @transform_6(%arg0: i32) -> i32 {
    %c0_i32 = arith.constant 0 : i32
    %c0_i32_0 = arith.constant 0 : i32
    return %c0_i32 : i32
  }
  func.func @transform_7(%arg0: i32) -> (i32, i32, i32) {
    %c0_i32 = arith.constant 0 : i32
    %c0_i32_0 = arith.constant 0 : i32
    %c0_i32_1 = arith.constant 0 : i32
    return %c0_i32, %arg0, %c0_i32_0 : i32, i32, i32
  }
}

</mosaic_0001>

<bundles_post_ra>
// kernel: tpu_custom_call.1
= control target key start
LH: loop header
LB: loop body
LE: loop exit
PB: predicated region body
PF: predicated region fallthrough
CT: control target
= control target key end

     0   :  { %s1597_s0 = inlined_call_operand.vmem [shape: f32[2,1,128], index: 0, kind: input, shape index: {}]   ;;  %s1598_s1 = inlined_call_operand.vmem [shape: f32[20], index: 1, kind: input, shape index: {}]   ;;  %s1599_s2 = inlined_call_operand.vmem [shape: f32[10], index: 2, kind: input, shape index: {}]   ;;  %s1600_s3 = inlined_call_operand.vmem [shape: f32[100], index: 3, kind: input, shape index: {}]   ;;  %s1601_s4 = inlined_call_operand.vmem [shape: f32[10], index: 4, kind: input, shape index: {}]   ;;  %s1602_s5 = inlined_call_operand.vmem [shape: f32[10], index: 5, kind: input, shape index: {}]   ;;  %s1603_s6 = inlined_call_operand.<no memory space> [shape: f32[1], index: 6, kind: input, shape index: {}]   ;;  %s1604_s7 = inlined_call_operand.hbm [shape: f32[1,1,128], index: 7, kind: output, shape index: {}]  }
   0x1   :  { %1605 = sst [smem:[#allocation32_spill]] %s1603_s6 }
   0x2   :  { %1606 = sst [smem:[#allocation33_spill]] %s1604_s7 }
   0x3   :  { %13 = vsyncpa [#allocation5], 0 }
   0x4   :  { %14 = vsyncpa [#allocation7], 0 }
   0x5   :  { %15 = vsyncpa [#allocation10], 0  ;;  %s35_s26 = sshll.u32 %s1599_s2, 4  ;;  %s36_s26 = int_to_ptr.vmem [resolvable:$true] %s35_s26 }
   0x6   :  { %16 = vsyncpa [#allocation4], 0  ;;  %s55_s29 = sshll.u32 %s1601_s4, 4  ;;  %s851_s30 = scalar_lea.vmem %s36_s26, 16  ;;  %s56_s29 = int_to_ptr.vmem [resolvable:$true] %s55_s29 }
   0x7   :  { %p852_p0 = scmp.ne.s32.totalorder %s36_s26, %s851_s30  ;;  %p856_p1 = scmp.lt.s32.totalorder %s36_s26, %s36_s26 }
   0x8   :  { %p857_p2 = scmp.lt.s32.totalorder %s851_s30, %s851_s30 }
   0xa   :  { %p858_p3 = por %p857_p2, %p856_p1 }
   0xc   :  { %p859_p4 = pnand %p858_p3, %p852_p0 }
   0xe   :  { %862 = shalt.err (!%p859_p4)
}
   0xf   :  { %s939_s8 = smov [#allocation6]   ;;  %s863_s9 = scalar_lea.vmem %s56_s29, 16 }
  0x10   :  { %38 = dma.vmem_to_smem %s36_s26, 16, %s939_s8, [#allocation7]  }
  0x11   :  { %p864_p5 = scmp.ne.s32.totalorder %s56_s29, %s863_s9  ;;  %p868_p6 = scmp.lt.s32.totalorder %s56_s29, %s56_s29 }
  0x12   :  { %p869_p7 = scmp.lt.s32.totalorder %s863_s9, %s863_s9 }
  0x14   :  { %p870_p8 = por %p869_p7, %p868_p6 }
  0x16   :  { %p871_p9 = pnand %p870_p8, %p864_p5 }
  0x18   :  { %874 = shalt.err (!%p871_p9)
}
  0x19   :  { %s940_s2 = smov [#allocation9]   ;;  %s25_s11 = sshll.u32 %s1598_s1, 4  ;;  %s26_s11 = int_to_ptr.vmem [resolvable:$true] %s25_s11 }
  0x1a   :  { %58 = dma.vmem_to_smem %s56_s29, 16, %s940_s2, [#allocation10]  }
  0x1b   :  { %s45_s14 = sshll.u32 %s1600_s3, 4  ;;  %s875_s15 = scalar_lea.vmem %s26_s11, 16  ;;  %s46_s14 = int_to_ptr.vmem [resolvable:$true] %s45_s14 }
  0x1c   :  { %p876_p10 = scmp.ne.s32.totalorder %s26_s11, %s875_s15  ;;  %p880_p11 = scmp.lt.s32.totalorder %s26_s11, %s26_s11 }
  0x1d   :  { %p881_p12 = scmp.lt.s32.totalorder %s875_s15, %s875_s15 }
  0x1f   :  { %p882_p13 = por %p881_p12, %p880_p11 }
  0x21   :  { %p883_p0 = pnand %p882_p13, %p876_p10 }
  0x23   :  { %886 = shalt.err (!%p883_p0)
}
  0x24   :  { %s941_s16 = smov [#allocation3]   ;;  %s887_s17 = scalar_lea.vmem %s46_s14, 16 }
  0x25   :  { %28 = dma.vmem_to_smem %s26_s11, 16, %s941_s16, [#allocation5]  }
  0x26   :  { %p888_p1 = scmp.ne.s32.totalorder %s46_s14, %s887_s17  ;;  %p892_p2 = scmp.lt.s32.totalorder %s46_s14, %s46_s14 }
  0x27   :  { %p893_p3 = scmp.lt.s32.totalorder %s887_s17, %s887_s17 }
  0x29   :  { %p894_p4 = por %p893_p3, %p892_p2 }
  0x2b   :  { %p895_p5 = pnand %p894_p4, %p888_p1 }
  0x2d   :  { %898 = shalt.err (!%p895_p5)
}
  0x2e   :  { %s942_s1 = smov [#allocation8]   ;;  %s65_s19 = sshll.u32 %s1602_s5, 4  ;;  %s66_s19 = int_to_ptr.vmem [resolvable:$true] %s65_s19 }
  0x2f   :  { %48 = dma.vmem_to_smem %s46_s14, 16, %s942_s1, [#allocation7]  }
  0x30   :  { %s899_s20 = scalar_lea.vmem %s66_s19, 16  ;;  %p904_p7 = scmp.lt.s32.totalorder %s66_s19, %s66_s19 }
  0x31   :  { %p900_p6 = scmp.ne.s32.totalorder %s66_s19, %s899_s20  ;;  %p905_p8 = scmp.lt.s32.totalorder %s899_s20, %s899_s20 }
  0x33   :  { %p906_p9 = por %p905_p8, %p904_p7 }
  0x35   :  { %p907_p10 = pnand %p906_p9, %p900_p6 }
  0x37   :  { %910 = shalt.err (!%p907_p10)
}
  0x38   :  { %s943_s21 = smov [#allocation11]  }
  0x39   :  { %68 = dma.vmem_to_smem %s66_s19, 16, %s943_s21, [#allocation10]  }
  0x3a   :  { %931 = dma.done.wait [#allocation5], 16  }
  0x3b   :  { %932 = vsyncadd [#allocation5], 4294967280 }
  0x3c   :  { %933 = dma.done.wait [#allocation7], 32  }
  0x3d   :  { %934 = vsyncadd [#allocation7], 4294967264 }
  0x3e   :  { %935 = dma.done.wait [#allocation10], 32  }
  0x3f   :  { %936 = vsyncadd [#allocation10], 4294967264 }
  0x40   :  { %86 = sfence }
  0x41   :  { %s1000_s22 = sld [smem:[#allocation3]]  ;;  %v1075_v0 = vld [vmem:[%s1597_s0] sm:$0x1]  ;;  %v1091_v4 = vld [vmem:[%s1597_s0 + $0x1] sm:$0x1] }
  0x42   :  { %s1002_s5 = sld [smem:[#allocation6]] }
  0x43   :  { %s1004_s23 = sld [smem:[#allocation3 + $0x1]] }
  0x44   :  { %s1006_s24 = sld [smem:[#allocation3 + $0x2]] }
  0x45   :  { %s1008_s25 = sld [smem:[#allocation6 + $0x1]] }
  0x46   :  { %s1010_s26 = sld [smem:[#allocation3 + $0x3]] }
  0x47   :  { %s1012_s27 = sld [smem:[#allocation3 + $0x4]]  ;;  %v91_v1 = vstv %s1000_s22 }
  0x48   :  { %s1014_s28 = sld [smem:[#allocation6 + $0x2]]  ;;  %v92_v3 = vmul.f32 %v91_v1, %v1075_v0  ;;  %v94_v5 = vstv %s1002_s5 }
  0x49   :  { %s1016_s29 = sld [smem:[#allocation3 + $0x5]]  ;;  %v97_v6 = vstv %s1004_s23 }
  0x4a   :  { %s1018_s30 = sld [smem:[#allocation3 + $0x6]]  ;;  %v102_v2 = vstv %s1006_s24  ;;  %v95_v10 = vadd.f32 %v94_v5, %v92_v3  ;;  %v98_v11 = vmul.f32 %v1091_v4, %v97_v6 }
  0x4b   :  { %s1020_s8 = sld [smem:[#allocation6 + $0x3]]  ;;  %v103_v7 = vmul.f32 %v102_v2, %v1075_v0  ;;  %v105_v8 = vstv %s1008_s25 }
  0x4c   :  { %s1022_s9 = sld [smem:[#allocation3 + $0x7]]  ;;  %v108_v9 = vstv %s1010_s26  ;;  %v99_v15 = vadd.f32 %v98_v11, %v95_v10 }
  0x4d   :  { %s1024_s2 = sld [smem:[#allocation3 + $0x8]]  ;;  %v106_v12 = vadd.f32 %v105_v8, %v103_v7  ;;  %v109_v13 = vmul.f32 %v1091_v4, %v108_v9  ;;  %v113_v14 = vstv %s1012_s27 }
  0x4e   :  { %s1026_s4 = sld [smem:[#allocation6 + $0x4]]  ;;  %v114_v17 = vmul.f32 %v113_v14, %v1075_v0  ;;  %v116_v19 = vstv %s1014_s28  ;;  %v1129_v23 = vmax.f32 %v99_v15, 0.0 }
  0x4f   :  { %s1028_s10 = sld [smem:[#allocation3 + $0x9]]  ;;  %v110_v18 = vadd.f32 %v109_v13, %v106_v12  ;;  %v119_v20 = vstv %s1016_s29 }
  0x50   :  { %s1030_s11 = sld [smem:[#allocation3 + $0xa]]  ;;  %v124_v16 = vstv %s1018_s30  ;;  %v117_v26 = vadd.f32 %v116_v19, %v114_v17  ;;  %v120_v27 = vmul.f32 %v1091_v4, %v119_v20 }
  0x51   :  { %s1032_s12 = sld [smem:[#allocation6 + $0x5]]  ;;  %v125_v21 = vmul.f32 %v124_v16, %v1075_v0  ;;  %v127_v24 = vstv %s1020_s8  ;;  %v1140_v30 = vmax.f32 %v110_v18, 0.0 }
  0x52   :  { %s1034_s13 = sld [smem:[#allocation3 + $0xb]]  ;;  %v130_v28 = vstv %s1022_s9  ;;  %v121_v41 = vadd.f32 %v120_v27, %v117_v26 }
  0x53   :  { %s1036_s14 = sld [smem:[#allocation3 + $0xc]]  ;;  %v135_v22 = vstv %s1024_s2  ;;  %v128_v33 = vadd.f32 %v127_v24, %v125_v21  ;;  %v131_v37 = vmul.f32 %v1091_v4, %v130_v28 }
  0x54   :  { %s1038_s15 = sld [smem:[#allocation6 + $0x6]]  ;;  %v136_v31 = vmul.f32 %v135_v22, %v1075_v0  ;;  %v138_v34 = vstv %s1026_s4  ;;  %v1175_v56 = vmax.f32 %v121_v41, 0.0 }
  0x55   :  { %s1040_s16 = sld [smem:[#allocation3 + $0xd]]  ;;  %v141_v35 = vstv %s1028_s10  ;;  %v132_v52 = vadd.f32 %v131_v37, %v128_v33 }
  0x56   :  { %s1042_s17 = sld [smem:[#allocation3 + $0xe]]  ;;  %v146_v25 = vstv %s1030_s11  ;;  %v139_v45 = vadd.f32 %v138_v34, %v136_v31  ;;  %v142_v46 = vmul.f32 %v1091_v4, %v141_v35 }
  0x57   :  { %s1044_s1 = sld [smem:[#allocation6 + $0x7]]  ;;  %v147_v36 = vmul.f32 %v146_v25, %v1075_v0  ;;  %v149_v38 = vstv %s1032_s12  ;;  %v1189_v3 = vmax.f32 %v132_v52, 0.0 }
  0x58   :  { %s1046_s3 = sld [smem:[#allocation3 + $0xf]]  ;;  %v152_v39 = vstv %s1034_s13  ;;  %v143_v59 = vadd.f32 %v142_v46, %v139_v45 }
  0x59   :  { %s1048_s18 = sld [smem:[#allocation3 + $0x10]]  ;;  %v157_v29 = vstv %s1036_s14  ;;  %v150_v49 = vadd.f32 %v149_v38, %v147_v36  ;;  %v153_v50 = vmul.f32 %v1091_v4, %v152_v39 }
  0x5a   :  { %s1050_s19 = sld [smem:[#allocation6 + $0x8]]  ;;  %v158_v40 = vmul.f32 %v157_v29, %v1075_v0  ;;  %v160_v42 = vstv %s1038_s15  ;;  %v1199_v11 = vmax.f32 %v143_v59, 0.0 }
  0x5b   :  { %1607 = sst [smem:[#allocation17_spill]] %s1040_s16  ;;  %v154_v62 = vadd.f32 %v153_v50, %v150_v49 }
  0x5c   :  { %1608 = sst [smem:[#allocation18_spill]] %s1042_s17  ;;  %v161_v53 = vadd.f32 %v160_v42, %v158_v40 }
  0x5d   :  { %1609 = sst [smem:[#allocation19_spill]] %s1044_s1  ;;  %v1205_v15 = vmax.f32 %v154_v62, 0.0 }
  0x5e   :  { %1610 = sst [smem:[#allocation20_spill]] %s1046_s3 }
  0x5f   :  { %1611 = sst [smem:[#allocation21_spill]] %s1048_s18 }
  0x60   :  { %1612 = sst [smem:[#allocation22_spill]] %s1050_s19 }
  0x61   :  { %s1052_s20 = sld [smem:[#allocation3 + $0x11]] }
  0x62   :  { %s1054_s21 = sld [smem:[#allocation3 + $0x12]] }
  0x63   :  { %s1056_s7 = sld [smem:[#allocation6 + $0x9]] }
  0x64   :  { %s1058_s6 = sld [smem:[#allocation3 + $0x13]] }
  0x65   :  { %s1060_s17 = sld [smem:[#allocation8]] }
  0x66   :  { %s1062_s1 = sld [smem:[#allocation9]] }
  0x67   :  { %1613 = sst [smem:[#allocation23_spill]] %s1052_s20 }
  0x68   :  { %1614 = sst [smem:[#allocation24_spill]] %s1054_s21 }
  0x69   :  { %1615 = sst [smem:[#allocation25_spill]] %s1056_s7 }
  0x6a   :  { %1616 = sst [smem:[#allocation26_spill]] %s1058_s6 }
  0x6b   :  { %s1064_s3 = sld [smem:[#allocation8 + $0x1]]  ;;  %v201_v32 = vstv %s1060_s17 }
  0x6c   :  { %s1066_s18 = sld [smem:[#allocation8 + $0x2]]  ;;  %v202_v44 = vmul.f32 %v201_v32, %v1129_v23  ;;  %v204_v47 = vstv %s1062_s1 }
  0x6d   :  { %s1068_s16 = sld [smem:[#allocation8 + $0x3]] }
  0x6e   :  { %s1070_s20 = sld [smem:[#allocation8 + $0x4]]  ;;  %v205_v57 = vadd.f32 %v204_v47, %v202_v44 }
  0x6f   :  { %s1078_s6 = sld [smem:[#allocation8 + $0x5]] }
  0x70   :  { %s1080_s7 = sld [smem:[#allocation8 + $0x6]] }
  0x71   :  { %1617 = sst [smem:[#allocation27_spill]] %s1064_s3 }
  0x72   :  { %1618 = sst [smem:[#allocation28_spill]] %s1066_s18 }
  0x73   :  { %1619 = sst [smem:[#allocation29_spill]] %s1068_s16 }
  0x74   :  { %1620 = sst [smem:[#allocation30_spill]] %s1070_s20 }
  0x75   :  { %s1083_s3 = sld [smem:[#allocation8 + $0x7]] }
  0x76   :  { %s1086_s16 = sld [smem:[#allocation8 + $0x8]] }
  0x77   :  { %s1095_s22 = sld [smem:[#allocation8 + $0x9]] }
  0x78   :  { %s1098_s24 = sld [smem:[#allocation11]] }
  0x79   :  { %s1102_s19 = sld [smem:[#allocation8 + $0xa]] }
  0x7a   :  { %s1105_s0 = sld [smem:[#allocation9 + $0x1]] }
  0x7b   :  { %s1107_s5 = sld [smem:[#allocation8 + $0xb]] }
  0x7c   :  { %s1111_s23 = sld [smem:[#allocation8 + $0xc]] }
  0x7d   :  { %s1113_s25 = sld [smem:[#allocation8 + $0xd]] }
  0x7e   :  { %1621 = sst [smem:[#allocation31_spill]] %s1098_s24 }
  0x7f   :  { %s1116_s26 = sld [smem:[#allocation8 + $0xe]]  ;;  %v247_v51 = vstv %s1102_s19 }
  0x80   :  { %s1119_s18 = sld [smem:[#allocation8 + $0xf]]  ;;  %v248_v61 = vmul.f32 %v247_v51, %v1129_v23  ;;  %v250_v1 = vstv %s1105_s0 }
  0x81   :  { %s1123_s27 = sld [smem:[#allocation8 + $0x10]]  ;;  %v253_v2 = vstv %s1107_s5 }
  0x82   :  { %s1127_s20 = sld [smem:[#allocation8 + $0x11]]  ;;  %v251_v13 = vadd.f32 %v250_v1, %v248_v61  ;;  %v254_v14 = vmul.f32 %v253_v2, %v1140_v30  ;;  %v257_v18 = vstv %s1111_s23 }
  0x83   :  { %s1133_s30 = sld [smem:[#allocation8 + $0x12]]  ;;  %v258_v32 = vmul.f32 %v257_v18, %v1175_v56  ;;  %v261_v36 = vstv %s1113_s25 }
  0x84   :  { %s1138_s28 = sld [smem:[#allocation8 + $0x13]]  ;;  %v255_v31 = vadd.f32 %v254_v14, %v251_v13  ;;  %v262_v46 = vmul.f32 %v261_v36, %v1189_v3 }
  0x85   :  { %s1622_s29 = sld [smem:[#allocation17_spill]]  ;;  %v265_v51 = vstv %s1116_s26 }
  0x86   :  { %s1144_s8 = sld [smem:[#allocation11 + $0x1]]  ;;  %v259_v45 = vadd.f32 %v258_v32, %v255_v31 }
  0x87   :  { %s1624_s2 = sld [smem:[#allocation27_spill]] }
  0x88   :  { %s1149_s9 = sld [smem:[#allocation8 + $0x14]]  ;;  %v263_v61 = vadd.f32 %v262_v46, %v259_v45 }
  0x89   :  { %s1155_s11 = sld [smem:[#allocation9 + $0x2]] }
  0x8a   :  { %s1625_s14 = sld [smem:[#allocation18_spill]] }
  0x8b   :  { %v163_v43 = vstv %s1622_s29  ;;  %s1160_s4 = sld [smem:[#allocation8 + $0x15]] }
  0x8c   :  { %1623 = sst [smem:[#allocation17_spill]] %s1144_s8  ;;  %v164_v54 = vmul.f32 %v1091_v4, %v163_v43  ;;  %v223_v43 = vstv %s1078_s6 }
  0x8d   :  { %v207_v48 = vstv %s1624_s2  ;;  %s1626_s10 = sld [smem:[#allocation28_spill]] }
  0x8e   :  { %s1165_s12 = sld [smem:[#allocation8 + $0x16]]  ;;  %v208_v58 = vmul.f32 %v207_v48, %v1140_v30  ;;  %v165_v5 = vadd.f32 %v164_v54, %v161_v53  ;;  %v294_v10 = vstv %s1149_s9  ;;  %v224_v53 = vmul.f32 %v223_v43, %v1205_v15 }
  0x8f   :  { %s1169_s13 = sld [smem:[#allocation8 + $0x17]]  ;;  %v295_v22 = vmul.f32 %v294_v10, %v1129_v23  ;;  %v297_v26 = vstv %s1155_s11 }
  0x90   :  { %v168_v55 = vstv %s1625_s14  ;;  %s1173_s15 = sld [smem:[#allocation8 + $0x18]]  ;;  %v209_v8 = vadd.f32 %v208_v58, %v205_v57  ;;  %v1211_v19 = vmax.f32 %v165_v5, 0.0  ;;  %v227_v58 = vstv %s1080_s7 }
  0x91   :  { %s1627_s17 = sld [smem:[#allocation19_spill]]  ;;  %v169_v63 = vmul.f32 %v168_v55, %v1075_v0  ;;  %v300_v27 = vstv %s1160_s4  ;;  %v298_v39 = vadd.f32 %v297_v26, %v295_v22  ;;  %v269_v5 = vstv %s1119_s18 }
  0x92   :  { %s1628_s1 = sld [smem:[#allocation20_spill]]  ;;  %v301_v40 = vmul.f32 %v300_v27, %v1140_v30  ;;  %v270_v18 = vmul.f32 %v269_v5, %v1205_v15 }
  0x93   :  { %s1178_s21 = sld [smem:[#allocation8 + $0x19]]  ;;  %v211_v60 = vstv %s1626_s10 }
  0x94   :  { %s1182_s19 = sld [smem:[#allocation8 + $0x1a]]  ;;  %v212_v9 = vmul.f32 %v211_v60, %v1175_v56  ;;  %v304_v44 = vstv %s1165_s12  ;;  %v302_v54 = vadd.f32 %v301_v40, %v298_v39  ;;  %v239_v39 = vstv %s1095_s22 }
  0x95   :  { %s1629_s29 = sld [smem:[#allocation29_spill]]  ;;  %v305_v55 = vmul.f32 %v304_v44, %v1175_v56  ;;  %v308_v59 = vstv %s1169_s13  ;;  %v277_v40 = vstv %s1127_s20 }
  0x96   :  { %s1187_s2 = sld [smem:[#allocation8 + $0x1b]]  ;;  %v213_v24 = vadd.f32 %v212_v9, %v209_v8  ;;  %v309_v9 = vmul.f32 %v308_v59, %v1189_v3 }
  0x97   :  { %s1630_s14 = sld [smem:[#allocation21_spill]]  ;;  %v171_v6 = vstv %s1627_s17  ;;  %v306_v8 = vadd.f32 %v305_v55, %v302_v54 }
  0x98   :  { %s1192_s8 = sld [smem:[#allocation8 + $0x1c]]  ;;  %v174_v7 = vstv %s1628_s1  ;;  %v172_v16 = vadd.f32 %v171_v6, %v169_v63  ;;  %v228_v6 = vmul.f32 %v227_v58, %v1211_v19 }
  0x99   :  { %s1632_s10 = sld [smem:[#allocation24_spill]]  ;;  %v175_v20 = vmul.f32 %v1091_v4, %v174_v7  ;;  %v231_v7 = vstv %s1083_s3  ;;  %v310_v26 = vadd.f32 %v309_v9, %v306_v8  ;;  %v316_v31 = vstv %s1178_s21 }
  0x9a   :  { %s1197_s24 = sld [smem:[#allocation8 + $0x1d]]  ;;  %v317_v43 = vmul.f32 %v316_v31, %v1205_v15  ;;  %v320_v46 = vstv %s1182_s19 }
  0x9b   :  { %v215_v12 = vstv %s1629_s29  ;;  %s1203_s0 = sld [smem:[#allocation8 + $0x1e]]  ;;  %v321_v58 = vmul.f32 %v320_v46, %v1211_v19 }
  0x9c   :  { %s1634_s5 = sld [smem:[#allocation30_spill]]  ;;  %v216_v25 = vmul.f32 %v215_v12, %v1189_v3  ;;  %v312_v12 = vstv %s1173_s15 }
  0x9d   :  { %v179_v17 = vstv %s1630_s14  ;;  %s1209_s17 = sld [smem:[#allocation11 + $0x2]]  ;;  %v313_v27 = vmul.f32 %v312_v12, %v1199_v11 }
  0x9e   :  { %1631 = sst [smem:[#allocation27_spill]] %s1192_s8  ;;  %v180_v28 = vmul.f32 %v179_v17, %v1075_v0  ;;  %v217_v41 = vadd.f32 %v216_v25, %v213_v24  ;;  %v273_v24 = vstv %s1123_s27  ;;  %v235_v25 = vstv %s1086_s16 }
  0x9f   :  { %s1635_s9 = sld [smem:[#allocation22_spill]]  ;;  %v190_v21 = vstv %s1632_s10  ;;  %v274_v36 = vmul.f32 %v273_v24, %v1211_v19 }
  0xa0   :  { %1633 = sst [smem:[#allocation18_spill]] %s1197_s24  ;;  %v191_v35 = vmul.f32 %v190_v21, %v1075_v0  ;;  %v176_v0 = vadd.f32 %v175_v20, %v172_v16 }
  0xa1   :  { %s1636_s1 = sld [smem:[#allocation23_spill]]  ;;  %v341_v47 = vstv %s1203_s0 }
  0xa2   :  { %s1216_s29 = sld [smem:[#allocation9 + $0x3]]  ;;  %v219_v29 = vstv %s1634_s5  ;;  %v342_v60 = vmul.f32 %v341_v47, %v1129_v23  ;;  %v1267_v1 = vmax.f32 %v176_v0, 0.0 }
  0xa3   :  { %s1637_s24 = sld [smem:[#allocation25_spill]]  ;;  %v220_v42 = vmul.f32 %v219_v29, %v1199_v11 }
  0xa4   :  { %s1638_s8 = sld [smem:[#allocation26_spill]]  ;;  %v232_v22 = vmul.f32 %v231_v7, %v1267_v1 }
  0xa5   :  { %s1221_s23 = sld [smem:[#allocation8 + $0x1f]]  ;;  %v182_v33 = vstv %s1635_s9  ;;  %v221_v57 = vadd.f32 %v220_v42, %v217_v41  ;;  %v314_v42 = vadd.f32 %v313_v27, %v310_v26 }
  0xa6   :  { %s1226_s14 = sld [smem:[#allocation8 + $0x20]]  ;;  %v183_v48 = vadd.f32 %v182_v33, %v180_v28 }
  0xa7   :  { %v185_v34 = vstv %s1636_s1  ;;  %s1232_s11 = sld [smem:[#allocation8 + $0x21]]  ;;  %v225_v10 = vadd.f32 %v224_v53, %v221_v57  ;;  %v318_v57 = vadd.f32 %v317_v43, %v314_v42 }
  0xa8   :  { %s1237_s4 = sld [smem:[#allocation8 + $0x22]]  ;;  %v186_v49 = vmul.f32 %v1091_v4, %v185_v34  ;;  %v344_v62 = vstv %s1216_s29 }
  0xa9   :  { %v193_v37 = vstv %s1637_s24  ;;  %s1242_s10 = sld [smem:[#allocation8 + $0x23]]  ;;  %v345_v13 = vadd.f32 %v344_v62, %v342_v60  ;;  %v229_v29 = vadd.f32 %v228_v6, %v225_v10  ;;  %v285_v6 = vstv %s1138_s28 }
  0xaa   :  { %v196_v38 = vstv %s1638_s8  ;;  %s1246_s24 = sld [smem:[#allocation8 + $0x24]]  ;;  %v194_v50 = vadd.f32 %v193_v37, %v191_v35  ;;  %v187_v2 = vadd.f32 %v186_v49, %v183_v48  ;;  %v322_v10 = vadd.f32 %v321_v58, %v318_v57 }
  0xab   :  { %s1250_s6 = sld [smem:[#allocation8 + $0x25]]  ;;  %v197_v52 = vmul.f32 %v1091_v4, %v196_v38  ;;  %v266_v4 = vmul.f32 %v265_v51, %v1199_v11  ;;  %v347_v63 = vstv %s1221_s23  ;;  %v233_v45 = vadd.f32 %v232_v22, %v229_v29 }
  0xac   :  { %s1255_s25 = sld [smem:[#allocation8 + $0x26]]  ;;  %v348_v14 = vmul.f32 %v347_v63, %v1140_v30  ;;  %v351_v20 = vstv %s1226_s14  ;;  %v1285_v21 = vmax.f32 %v187_v2, 0.0 }
  0xad   :  { %s1260_s8 = sld [smem:[#allocation8 + $0x28]]  ;;  %v198_v16 = vadd.f32 %v197_v52, %v194_v50  ;;  %v267_v17 = vadd.f32 %v266_v4, %v263_v61  ;;  %v352_v33 = vmul.f32 %v351_v20, %v1175_v56  ;;  %v355_v37 = vstv %s1232_s11 }
  0xae   :  { %s1265_s26 = sld [smem:[#allocation8 + $0x27]]  ;;  %v349_v32 = vadd.f32 %v348_v14, %v345_v13  ;;  %v236_v38 = vmul.f32 %v235_v25, %v1285_v21  ;;  %v356_v48 = vmul.f32 %v355_v37, %v1189_v3  ;;  %v278_v50 = vmul.f32 %v277_v40, %v1267_v1 }
  0xaf   :  { %s1270_s12 = sld [smem:[#allocation9 + $0x4]]  ;;  %v1300_v34 = vmax.f32 %v198_v16, 0.0  ;;  %v271_v35 = vadd.f32 %v270_v18, %v267_v17  ;;  %v359_v51 = vstv %s1237_s4  ;;  %v281_v52 = vstv %s1133_s30 }
  0xb0   :  { %s1275_s7 = sld [smem:[#allocation8 + $0x29]]  ;;  %v353_v47 = vadd.f32 %v352_v33, %v349_v32  ;;  %v237_v60 = vadd.f32 %v236_v38, %v233_v45  ;;  %v324_v61 = vstv %s1187_s2  ;;  %v360_v62 = vmul.f32 %v359_v51, %v1199_v11 }
  0xb1   :  { %s1279_s13 = sld [smem:[#allocation11 + $0x3]]  ;;  %v275_v49 = vadd.f32 %v274_v36, %v271_v35  ;;  %v240_v55 = vmul.f32 %v239_v39, %v1300_v34  ;;  %v282_v2 = vmul.f32 %v281_v52, %v1285_v21  ;;  %v363_v5 = vstv %s1242_s10 }
  0xb2   :  { %s1283_s3 = sld [smem:[#allocation8 + $0x2a]]  ;;  %v357_v4 = vadd.f32 %v356_v48, %v353_v47  ;;  %v325_v12 = vmul.f32 %v324_v61, %v1267_v1  ;;  %v364_v18 = vmul.f32 %v363_v5, %v1205_v15  ;;  %v286_v22 = vmul.f32 %v285_v6, %v1300_v34 }
  0xb3   :  { %s1289_s18 = sld [smem:[#allocation8 + $0x2b]]  ;;  %v388_v28 = vstv %s1260_s8  ;;  %v279_v63 = vadd.f32 %v278_v50, %v275_v49  ;;  %v241_v14 = vadd.f32 %v240_v55, %v237_v60  ;;  %v367_v24 = vstv %s1246_s24 }
  0xb4   :  { %s1294_s15 = sld [smem:[#allocation8 + $0x2c]]  ;;  %v389_v41 = vmul.f32 %v388_v28, %v1129_v23  ;;  %v361_v17 = vadd.f32 %v360_v62, %v357_v4  ;;  %v326_v32 = vadd.f32 %v325_v12, %v322_v10  ;;  %v368_v39 = vmul.f32 %v367_v24, %v1211_v19 }
  0xb5   :  { %s1298_s0 = sld [smem:[#allocation8 + $0x2d]]  ;;  %v391_v44 = vstv %s1270_s12  ;;  %v283_v20 = vadd.f32 %v282_v2, %v279_v63  ;;  %v242_v36 = vmax.f32 %v241_v14, 0.0 }
  0xb6   :  { %s1304_s16 = sld [smem:[#allocation8 + $0x2e]]  ;;  %v394_v0 = vstv %s1275_s7  ;;  %v392_v53 = vadd.f32 %v391_v44, %v389_v41  ;;  %v365_v38 = vadd.f32 %v364_v18, %v361_v17  ;;  %v371_v41 = vstv %s1250_s6 }
  0xb7   :  { %s1310_s27 = sld [smem:[#allocation8 + $0x2f]]  ;;  %v395_v54 = vmul.f32 %v394_v0, %v1140_v30  ;;  %v287_v40 = vadd.f32 %v286_v22, %v283_v20  ;;  %v372_v52 = vmul.f32 %v371_v41, %v1267_v1 }
  0xb8   :  { %s1315_s21 = sld [smem:[#allocation8 + $0x30]]  ;;  %v398_v59 = vstv %s1283_s3  ;;  %v369_v51 = vadd.f32 %v368_v39, %v365_v38 }
  0xb9   :  { %s1319_s22 = sld [smem:[#allocation8 + $0x32]]  ;;  %v396_v7 = vadd.f32 %v395_v54, %v392_v53  ;;  %v399_v8 = vmul.f32 %v398_v59, %v1175_v56  ;;  %v402_v13 = vstv %s1289_s18  ;;  %v288_v53 = vmax.f32 %v287_v40, 0.0 }
  0xba   :  { %s1323_s20 = sld [smem:[#allocation9 + $0x5]]  ;;  %v403_v27 = vmul.f32 %v402_v13, %v1189_v3  ;;  %v406_v35 = vstv %s1294_s15  ;;  %v375_v54 = vstv %s1255_s25  ;;  %v373_v5 = vadd.f32 %v372_v52, %v369_v51 }
  0xbb   :  { %s1327_s5 = sld [smem:[#allocation8 + $0x33]]  ;;  %v400_v26 = vadd.f32 %v399_v8, %v396_v7  ;;  %v407_v0 = vmul.f32 %v406_v35, %v1199_v11  ;;  %v410_v48 = vstv %s1298_s0  ;;  %v376_v6 = vmul.f32 %v375_v54, %v1285_v21 }
  0xbc   :  { %s1332_s19 = sld [smem:[#allocation8 + $0x31]]  ;;  %v411_v59 = vmul.f32 %v410_v48, %v1205_v15  ;;  %v414_v62 = vstv %s1304_s16  ;;  %v379_v7 = vstv %s1265_s26 }
  0xbd   :  { %s1639_s30 = sld [smem:[#allocation27_spill]]  ;;  %v404_v44 = vadd.f32 %v403_v27, %v400_v26  ;;  %v418_v22 = vstv %s1310_s27  ;;  %v377_v27 = vadd.f32 %v376_v6, %v373_v5 }
  0xbe   :  { %s1336_s9 = sld [smem:[#allocation11 + $0x4]] }
  0xbf   :  { %s1340_s1 = sld [smem:[#allocation8 + $0x34]]  ;;  %v435_v9 = vstv %s1319_s22  ;;  %v408_v58 = vadd.f32 %v407_v0, %v404_v44  ;;  %v384_v44 = vstv %s1279_s13 }
  0xc0   :  { %s1345_s29 = sld [smem:[#allocation8 + $0x35]]  ;;  %v436_v25 = vmul.f32 %v435_v9, %v1129_v23  ;;  %v438_v28 = vstv %s1323_s20 }
  0xc1   :  { %s1349_s2 = sld [smem:[#allocation8 + $0x36]]  ;;  %v441_v29 = vstv %s1327_s5  ;;  %v412_v14 = vadd.f32 %v411_v59, %v408_v58 }
  0xc2   :  { %s1640_s23 = sld [smem:[#allocation31_spill]]  ;;  %v439_v42 = vadd.f32 %v438_v28, %v436_v25  ;;  %v442_v43 = vmul.f32 %v441_v29, %v1140_v30  ;;  %v380_v28 = vmul.f32 %v379_v7, %v1300_v34 }
  0xc3   :  { %v328_v16 = vstv %s1639_s30  ;;  %s1353_s28 = sld [smem:[#allocation8 + $0x37]] }
  0xc4   :  { %s1641_s14 = sld [smem:[#allocation18_spill]]  ;;  %v329_v33 = vmul.f32 %v328_v16, %v1285_v21  ;;  %v443_v55 = vadd.f32 %v442_v43, %v439_v42  ;;  %v415_v16 = vmul.f32 %v414_v62, %v1211_v19  ;;  %v381_v43 = vadd.f32 %v380_v28, %v377_v27 }
  0xc5   :  { %s1358_s11 = sld [smem:[#allocation8 + $0x38]]  ;;  %v445_v45 = vstv %s1340_s1 }
  0xc6   :  { %s1363_s4 = sld [smem:[#allocation8 + $0x39]]  ;;  %v330_v46 = vadd.f32 %v329_v33, %v326_v32  ;;  %v446_v57 = vmul.f32 %v445_v45, %v1175_v56  ;;  %v449_v60 = vstv %s1345_s29  ;;  %v416_v35 = vadd.f32 %v415_v16, %v412_v14 }
  0xc7   :  { %s1368_s10 = sld [smem:[#allocation8 + $0x3a]]  ;;  %v450_v10 = vmul.f32 %v449_v60, %v1189_v3  ;;  %v453_v17 = vstv %s1349_s2  ;;  %v382_v58 = vmax.f32 %v381_v43, 0.0 }
  0xc8   :  { %v244_v31 = vstv %s1640_s23  ;;  %s1642_s24 = sld [smem:[#allocation17_spill]]  ;;  %v447_v9 = vadd.f32 %v446_v57, %v443_v55  ;;  %v454_v33 = vmul.f32 %v453_v17, %v1199_v11 }
  0xc9   :  { %s1372_s8 = sld [smem:[#allocation8 + $0x3c]]  ;;  %v245_v49 = vmul.f32 %v244_v31, %v242_v36  ;;  %v337_v31 = vstv %s1209_s17  ;;  %v419_v36 = vmul.f32 %v418_v22, %v1267_v1  ;;  %v457_v38 = vstv %s1353_s28 }
  0xca   :  { %v332_v37 = vstv %s1641_s14  ;;  %s1376_s12 = sld [smem:[#allocation9 + $0x6]]  ;;  %v451_v32 = vadd.f32 %v450_v10, %v447_v9  ;;  %v458_v48 = vmul.f32 %v457_v38, %v1205_v15 }
  0xcb   :  { %s1380_s7 = sld [smem:[#allocation8 + $0x3d]]  ;;  %v333_v47 = vmul.f32 %v332_v37, %v1300_v34  ;;  %v422_v37 = vstv %s1315_s21 }
  0xcc   :  { %s1384_s3 = sld [smem:[#allocation8 + $0x3e]]  ;;  %v423_v45 = vmul.f32 %v422_v37, %v1285_v21  ;;  %v465_v60 = vstv %s1363_s4 }
  0xcd   :  { %s1388_s6 = sld [smem:[#allocation8 + $0x3f]]  ;;  %v334_v4 = vadd.f32 %v333_v47, %v330_v46  ;;  %v426_v46 = vstv %s1332_s19  ;;  %v455_v47 = vadd.f32 %v454_v33, %v451_v32  ;;  %v466_v14 = vmul.f32 %v465_v60, %v1267_v1 }
  0xce   :  { %v290_v50 = vstv %s1642_s24  ;;  %s1392_s18 = sld [smem:[#allocation8 + $0x3b]]  ;;  %v427_v59 = vmul.f32 %v426_v46, %v1300_v34  ;;  %v469_v28 = vstv %s1368_s10 }
  0xcf   :  { %s1396_s15 = sld [smem:[#allocation11 + $0x5]]  ;;  %v482_v61 = vstv %s1372_s8  ;;  %v291_v20 = vmul.f32 %v290_v50, %v288_v53  ;;  %v335_v26 = vmax.f32 %v334_v4, 0.0  ;;  %v461_v50 = vstv %s1358_s11 }
  0xd0   :  { %v483_v63 = vmul.f32 %v482_v61, %v1129_v23  ;;  %v485_v2 = vstv %s1376_s12  ;;  %s1402_s25 = sld [smem:[#allocation8 + $0x40]]  ;;  %v459_v4 = vadd.f32 %v458_v48, %v455_v47  ;;  %v462_v62 = vmul.f32 %v461_v50, %v1211_v19 }
  0xd1   :  { %v488_v8 = vstv %s1380_s7  ;;  %s1407_s0 = sld [smem:[#allocation8 + $0x41]]  ;;  %v292_v39 = vadd.f32 %v291_v20, %v245_v49  ;;  %v338_v42 = vmul.f32 %v337_v31, %v335_v26  ;;  %v420_v49 = vadd.f32 %v419_v36, %v416_v35 }
  0xd2   :  { %v486_v12 = vadd.f32 %v485_v2, %v483_v63  ;;  %v489_v13 = vmul.f32 %v488_v8, %v1140_v30  ;;  %s1411_s16 = sld [smem:[#allocation8 + $0x42]]  ;;  %v492_v18 = vstv %s1384_s3  ;;  %v385_v26 = vmul.f32 %v384_v44, %v382_v58 }
  0xd3   :  { %s1416_s22 = sld [smem:[#allocation8 + $0x43]]  ;;  %v493_v25 = vmul.f32 %v492_v18, %v1175_v56  ;;  %v496_v29 = vstv %s1388_s6  ;;  %v424_v5 = vadd.f32 %v423_v45, %v420_v49  ;;  %v463_v18 = vadd.f32 %v462_v62, %v459_v4 }
  0xd4   :  { %v490_v24 = vadd.f32 %v489_v13, %v486_v12  ;;  %s1420_s26 = sld [smem:[#allocation8 + $0x44]]  ;;  %v497_v41 = vmul.f32 %v496_v29, %v1189_v3  ;;  %v431_v35 = vstv %s1336_s9  ;;  %v473_v36 = vstv %s1392_s18 }
  0xd5   :  { %s1424_s20 = sld [smem:[#allocation8 + $0x46]]  ;;  %v428_v27 = vadd.f32 %v427_v59, %v424_v5  ;;  %v467_v38 = vadd.f32 %v466_v14, %v463_v18  ;;  %v474_v49 = vmul.f32 %v473_v36, %v1300_v34 }
  0xd6   :  { %s1428_s27 = sld [smem:[#allocation9 + $0x7]]  ;;  %v494_v40 = vadd.f32 %v493_v25, %v490_v24  ;;  %v500_v0 = vstv %s1402_s25  ;;  %v339_v25 = vadd.f32 %v338_v42, %v292_v39  ;;  %v470_v39 = vmul.f32 %v469_v28, %v1285_v21 }
  0xd7   :  { %s1433_s5 = sld [smem:[#allocation8 + $0x47]]  ;;  %v504_v51 = vstv %s1407_s0  ;;  %v501_v54 = vmul.f32 %v500_v0, %v1199_v11  ;;  %v429_v43 = vmax.f32 %v428_v27, 0.0 }
  0xd8   :  { %s1436_s17 = sld [smem:[#allocation8 + $0x48]]  ;;  %v498_v53 = vadd.f32 %v497_v41, %v494_v40  ;;  %v505_v6 = vmul.f32 %v504_v51, %v1205_v15  ;;  %v508_v16 = vstv %s1411_s16  ;;  %v386_v42 = vadd.f32 %v385_v26, %v339_v25 }
  0xd9   :  { %s1440_s30 = sld [smem:[#allocation8 + $0x49]]  ;;  %v509_v31 = vmul.f32 %v508_v16, %v1211_v19  ;;  %v512_v32 = vstv %s1416_s22 }
  0xda   :  { %s1445_s21 = sld [smem:[#allocation8 + $0x4a]]  ;;  %v502_v9 = vadd.f32 %v501_v54, %v498_v53  ;;  %v513_v44 = vmul.f32 %v512_v32, %v1267_v1  ;;  %v516_v46 = vstv %s1420_s26  ;;  %v471_v53 = vadd.f32 %v470_v39, %v467_v38 }
  0xdb   :  { %v529_v52 = vstv %s1424_s20  ;;  %s1450_s1 = sld [smem:[#allocation8 + $0x4b]]  ;;  %v517_v58 = vmul.f32 %v516_v46, %v1285_v21 }
  0xdc   :  { %s1453_s13 = sld [smem:[#allocation8 + $0x45]]  ;;  %v530_v55 = vmul.f32 %v529_v52, %v1129_v23  ;;  %v532_v57 = vstv %s1428_s27  ;;  %v506_v29 = vadd.f32 %v505_v6, %v502_v9  ;;  %v432_v9 = vmul.f32 %v431_v35, %v429_v43 }
  0xdd   :  { %s1459_s19 = sld [smem:[#allocation11 + $0x6]]  ;;  %v535_v61 = vstv %s1433_s5  ;;  %v475_v14 = vadd.f32 %v474_v49, %v471_v53 }
  0xde   :  { %v533_v63 = vadd.f32 %v532_v57, %v530_v55  ;;  %v536_v2 = vmul.f32 %v535_v61, %v1140_v30  ;;  %s1464_s29 = sld [smem:[#allocation8 + $0x4c]]  ;;  %v539_v7 = vstv %s1436_s17  ;;  %v510_v45 = vadd.f32 %v509_v31, %v506_v29 }
  0xdf   :  { %v543_v8 = vstv %s1440_s30  ;;  %s1469_s2 = sld [smem:[#allocation8 + $0x4d]]  ;;  %v540_v12 = vmul.f32 %v539_v7, %v1175_v56  ;;  %v433_v28 = vadd.f32 %v432_v9, %v386_v42 }
  0xe0   :  { %v537_v10 = vadd.f32 %v536_v2, %v533_v63  ;;  %v544_v13 = vmul.f32 %v543_v8, %v1189_v3  ;;  %s1473_s23 = sld [smem:[#allocation8 + $0x4e]]  ;;  %v547_v17 = vstv %s1445_s21  ;;  %v514_v4 = vadd.f32 %v513_v44, %v510_v45 }
  0xe1   :  { %s1478_s28 = sld [smem:[#allocation8 + $0x50]]  ;;  %v548_v22 = vmul.f32 %v547_v17, %v1199_v11  ;;  %v551_v24 = vstv %s1450_s1  ;;  %v478_v17 = vstv %s1396_s15 }
  0xe2   :  { %v541_v20 = vadd.f32 %v540_v12, %v537_v10  ;;  %s1482_s14 = sld [smem:[#allocation9 + $0x8]]  ;;  %v552_v37 = vmul.f32 %v551_v24, %v1205_v15  ;;  %v520_v59 = vstv %s1453_s13  ;;  %v518_v24 = vadd.f32 %v517_v58, %v514_v4 }
  0xe3   :  { %s1485_s11 = sld [smem:[#allocation8 + $0x51]]  ;;  %v521_v18 = vmul.f32 %v520_v59, %v1300_v34  ;;  %v525_v35 = vstv %s1459_s19 }
  0xe4   :  { %v545_v33 = vadd.f32 %v544_v13, %v541_v20  ;;  %s1489_s4 = sld [smem:[#allocation8 + $0x52]]  ;;  %v555_v41 = vstv %s1464_s29 }
  0xe5   :  { %s1494_s24 = sld [smem:[#allocation8 + $0x53]]  ;;  %v556_v51 = vmul.f32 %v555_v41, %v1211_v19  ;;  %v559_v54 = vstv %s1469_s2  ;;  %v522_v42 = vadd.f32 %v521_v18, %v518_v24  ;;  %s944_s2 = smov [#allocation12]  }
  0xe6   :  { %v549_v40 = vadd.f32 %v548_v22, %v545_v33  ;;  %s1498_s10 = sld [smem:[#allocation8 + $0x54]]  ;;  %v560_v6 = vmul.f32 %v559_v54, %v1267_v1  ;;  %v563_v10 = vstv %s1473_s23  ;;  %v476_v33 = vmax.f32 %v475_v14, 0.0  ;;  %s684_s23 = sshll.u32 %s944_s2, 4  ;;  %s685_s23 = int_to_ptr.vmem [resolvable:$true] %s684_s23 }
  0xe7   :  { %v576_v0 = vstv %s1478_s28  ;;  %s1502_s9 = sld [smem:[#allocation8 + $0x55]]  ;;  %v564_v26 = vmul.f32 %v563_v10, %v1285_v21  ;;  %s911_s28 = scalar_lea.vmem %s685_s23, 16 }
  0xe8   :  { %v577_v47 = vmul.f32 %v576_v0, %v1129_v23  ;;  %v579_v48 = vstv %s1482_s14  ;;  %s1507_s8 = sld [smem:[#allocation8 + $0x56]]  ;;  %v553_v50 = vadd.f32 %v552_v37, %v549_v40  ;;  %p912_p11 = scmp.ne.s32.totalorder %s685_s23, %s911_s28 }
  0xe9   :  { %v582_v52 = vstv %s1485_s11  ;;  %s1512_s12 = sld [smem:[#allocation8 + $0x57]]  ;;  %s915_s14 = scalar_lea.vmem %s685_s23, 32 }
  0xea   :  { %s1515_s7 = sld [smem:[#allocation8 + $0x4f]]  ;;  %v580_v55 = vadd.f32 %v579_v48, %v577_v47  ;;  %v583_v57 = vmul.f32 %v582_v52, %v1140_v30  ;;  %v586_v60 = vstv %s1489_s4  ;;  %v557_v5 = vadd.f32 %v556_v51, %v553_v50  ;;  %p916_p12 = scmp.lt.s32.totalorder %s685_s23, %s685_s23 }
  0xeb   :  { %v590_v61 = vstv %s1494_s24  ;;  %s1522_s3 = sld [smem:[#allocation8 + $0x58]]  ;;  %v587_v63 = vmul.f32 %v586_v60, %v1175_v56  ;;  %v479_v48 = vmul.f32 %v478_v17, %v476_v33  ;;  %p917_p13 = scmp.lt.s32.totalorder %s915_s14, %s911_s28 }
  0xec   :  { %v584_v62 = vadd.f32 %v583_v57, %v580_v55  ;;  %v591_v2 = vmul.f32 %v590_v61, %v1189_v3  ;;  %s1526_s6 = sld [smem:[#allocation8 + $0x59]]  ;;  %v594_v7 = vstv %s1498_s10  ;;  %v561_v25 = vadd.f32 %v560_v6, %v557_v5 }
  0xed   :  { %v598_v8 = vstv %s1502_s9  ;;  %s1531_s18 = sld [smem:[#allocation8 + $0x5a]]  ;;  %v595_v13 = vmul.f32 %v594_v7, %v1199_v11  ;;  %v523_v57 = vmax.f32 %v522_v42, 0.0  ;;  %p918_p0 = por %p917_p13, %p916_p12 }
  0xee   :  { %v588_v12 = vadd.f32 %v587_v63, %v584_v62  ;;  %s1535_s25 = sld [smem:[#allocation9 + $0x9]]  ;;  %v602_v16 = vstv %s1507_s8  ;;  %v599_v22 = vmul.f32 %v598_v8, %v1205_v15  ;;  %v565_v43 = vadd.f32 %v564_v26, %v561_v25 }
  0xef   :  { %s1538_s0 = sld [smem:[#allocation8 + $0x5b]]  ;;  %v606_v27 = vstv %s1512_s12  ;;  %v603_v32 = vmul.f32 %v602_v16, %v1211_v19  ;;  %v526_v5 = vmul.f32 %v525_v35, %v523_v57  ;;  %p919_p1 = pnand %p918_p0, %p912_p11 }
  0xf0   :  { %v592_v20 = vadd.f32 %v591_v2, %v588_v12  ;;  %s1543_s16 = sld [smem:[#allocation8 + $0x5c]]  ;;  %v567_v29 = vstv %s1515_s7  ;;  %v607_v39 = vmul.f32 %v606_v27, %v1267_v1 }
  0xf1   :  { %s1547_s22 = sld [smem:[#allocation8 + $0x5d]]  ;;  %v610_v36 = vstv %s1522_s3  ;;  %v568_v44 = vmul.f32 %v567_v29, %v1300_v34 }
  0xf2   :  { %v596_v31 = vadd.f32 %v595_v13, %v592_v20  ;;  %s1551_s15 = sld [smem:[#allocation8 + $0x5e]]  ;;  %v611_v46 = vmul.f32 %v610_v36, %v1285_v21  ;;  %v614_v49 = vstv %s1526_s6 }
  0xf3   :  { %v623_v37 = vstv %s1531_s18  ;;  %s1556_s26 = sld [smem:[#allocation8 + $0x5f]]  ;;  %v569_v58 = vadd.f32 %v568_v44, %v565_v43  ;;  %v615_v61 = vmul.f32 %v614_v49, %v1300_v34 }
  0xf4   :  { %v600_v38 = vadd.f32 %v599_v22, %v596_v31  ;;  %v624_v40 = vmul.f32 %v623_v37, %v1129_v23  ;;  %v626_v41 = vstv %s1535_s25  ;;  %s1561_s20 = sld [smem:[#allocation8 + $0x60]] }
  0xf5   :  { %v629_v0 = vstv %s1538_s0  ;;  %s1565_s27 = sld [smem:[#allocation8 + $0x61]]  ;;  %v570_v7 = vmax.f32 %v569_v58, 0.0 }
  0xf6   :  { %s1567_s5 = sld [smem:[#allocation11 + $0x7]]  ;;  %v604_v45 = vadd.f32 %v603_v32, %v600_v38  ;;  %v627_v47 = vadd.f32 %v626_v41, %v624_v40  ;;  %v630_v23 = vmul.f32 %v629_v0, %v1140_v30  ;;  %v633_v50 = vstv %s1543_s16 }
  0xf7   :  { %v637_v51 = vstv %s1547_s22  ;;  %s1574_s17 = sld [smem:[#allocation8 + $0x62]]  ;;  %v634_v54 = vmul.f32 %v633_v50, %v1175_v56 }
  0xf8   :  { %v608_v52 = vadd.f32 %v607_v39, %v604_v45  ;;  %v631_v53 = vadd.f32 %v630_v23, %v627_v47  ;;  %v638_v55 = vmul.f32 %v637_v51, %v1189_v3  ;;  %v641_v59 = vstv %s1551_s15  ;;  %s839_s30 = sld [smem:[#allocation8 + $0x63]] }
  0xf9   :  { %v645_v60 = vstv %s1556_s26  ;;  %v642_v62 = vmul.f32 %v641_v59, %v1199_v11  ;;  %s828_s21 = sld [smem:[#allocation11 + $0x8]]  ;;  %v480_v3 = vadd.f32 %v479_v48, %v433_v28 }
  0xfa   :  { %v612_v30 = vadd.f32 %v611_v46, %v608_v52  ;;  %v635_v4 = vadd.f32 %v634_v54, %v631_v53  ;;  %v649_v63 = vstv %s1561_s20  ;;  %v646_v56 = vmul.f32 %v645_v60, %v1205_v15  ;;  %s840_s1 = sld [smem:[#allocation11 + $0x9]] }
  0xfb   :  { %v653_v6 = vstv %s1565_s27  ;;  %v650_v10 = vmul.f32 %v649_v63, %v1211_v19  ;;  %v527_v17 = vadd.f32 %v526_v5, %v480_v3  ;;  %s1643_s29 = sld [smem:[#allocation32_spill]] }
  0xfc   :  { %v639_v2 = vadd.f32 %v638_v55, %v635_v4  ;;  %v616_v8 = vadd.f32 %v615_v61, %v612_v30  ;;  %v572_v12 = vstv %s1567_s5  ;;  %v654_v16 = vmul.f32 %v653_v6, %v1267_v1 }
  0xfd   :  { %v657_v13 = vstv %s1574_s17  ;;  %v573_v18 = vmul.f32 %v572_v12, %v570_v7 }
  0xfe   :  { %v643_v9 = vadd.f32 %v642_v62, %v639_v2  ;;  %v661_v11 = vstv %s839_s30  ;;  %v617_v20 = vmax.f32 %v616_v8, 0.0  ;;  %v658_v15 = vmul.f32 %v657_v13, %v1285_v21 }
  0xff   :  { %v619_v24 = vstv %s828_s21  ;;  %v662_v26 = vmul.f32 %v661_v11, %v1300_v34  ;;  %v574_v27 = vadd.f32 %v573_v18, %v527_v17 }
 0x100   :  { %v647_v14 = vadd.f32 %v646_v56, %v643_v9  ;;  %v620_v28 = vmul.f32 %v619_v24, %v617_v20  ;;  %v666_v31 = vstv %s840_s1 }
 0x101   :  { %v670_v35 = vstv %s1643_s29 }
 0x102   :  { %v651_v22 = vadd.f32 %v650_v10, %v647_v14  ;;  %v621_v32 = vadd.f32 %v620_v28, %v574_v27 }
 0x104   :  { %v655_v25 = vadd.f32 %v654_v16, %v651_v22 }
 0x106   :  { %v659_v19 = vadd.f32 %v658_v15, %v655_v25 }
 0x108   :  { %v663_v29 = vadd.f32 %v662_v26, %v659_v19 }
 0x10a   :  { %v664_v33 = vmax.f32 %v663_v29, 0.0 }
 0x10c   :  { %v667_v1 = vmul.f32 %v666_v31, %v664_v33 }
 0x10e   :  { %v668_v36 = vadd.f32 %v667_v1, %v621_v32 }
 0x110   :  { %v671_v37 = vadd.f32 %v670_v35, %v668_v36 }
 0x112   :  { %v672_v38 = vsub.f32 0.0, %v671_v37 }
 0x114   :  { %v673_v21 = vmul.f32 1.442695, %v672_v38 }
 0x116   :  { %847 = vpow2.f32 %v673_v21 }
 0x123   :  { %v848_v39 = vpop.eup %847 }
 0x124   :  { %v675_v40 = vadd.f32 1.0, %v848_v39 }
 0x126   :  { %849 = vrcp.f32 %v675_v40 }
 0x133   :  { %v850_v34 = vpop.eup %849 }
 0x134   :  { %677 = vst [vmem:[#allocation12] sm:$0x1] %v850_v34 }
 0x135   :  { %922 = shalt.err (!%p919_p1)
}
 0x136   :  { %s1644_s24 = sld [smem:[#allocation33_spill]] }
 0x13c   :  { %687 = dma.vmem_to_hbm [thread:$0]  %s685_s23, 16, %s1644_s24, [#allocation4]  }
 0x13d   :  { %937 = dma.done.wait [#allocation4], 16  }
 0x13e   :  { %938 = vsyncadd [#allocation4], 4294967280 }
 0x13f   :  { %691 = vsyncpa [#allocation4], 1 }
 0x140   :  { %692 = vsyncpa [#allocation5], 1 }
 0x141   :  { %693 = vsyncpa [#allocation7], 1 }
 0x142   :  { %694 = vsyncpa [#allocation10], 1 }

</bundles_post_ra>
